<compile_context>
chip_gen: v7x
topology: tpu7x:2x2x1
jax: 0.10.0
libtpu: 0.0.40
codegen_flags: <defaults>
</compile_context>

<pallas_src>
import numpy as np
import jax
import jax.numpy as jnp
from jax.experimental import pallas as pl
from jax.experimental.pallas import tpu as pltpu

Z_DIM = 20
HIDDEN = 512
OUTPUT_SHAPE = (1, 28, 28)
OUT_DIM = int(np.prod(OUTPUT_SHAPE))  # 784


def mlp_decoder_kernel(z_ref, w1_ref, b1_ref, w2_ref, b2_ref, out_ref):
    # Layer 1: Linear(z_dim -> hidden) on the MXU (bf16 inputs, f32 accumulate).
    h = jnp.dot(z_ref[...].astype(jnp.bfloat16), w1_ref[...],
                preferred_element_type=jnp.float32)
    # Bias + ReLU in f32 (accumulator is already f32; avoids bf16 VALU on v5e).
    h = jnp.maximum(h + b1_ref[...], 0.0)
    # Layer 2: Linear(hidden -> prod(output_shape)); cast only at the dot input.
    o = jnp.dot(h.astype(jnp.bfloat16), w2_ref[...],
                preferred_element_type=jnp.float32)
    # Logits, no sigmoid (matches the PyTorch module).  Stored in out_ref.dtype
    # (bf16 by default) to halve the dominant output writeback at large B.
    out_ref[...] = (o + b2_ref[...]).astype(out_ref.dtype)


def _cdiv(a, b):
    return -(-a // b)


def _round_up(x, m):
    return _cdiv(x, m) * m


def _choose_batch_tile(B, block_b):
    """Pick (TB, Bp) minimizing batch padding.

    Balanced tiles cap padding at <align rows; larger MXU-friendly alignments
    (256/128) are preferred only when they do not increase padding.  For
    non-trivial B we force >=2 tiles so the batch axis can shard across the two
    v7x TensorCores (no effect on v5e/v6e, which have one TC).
    """
    n_tiles = max(1, _cdiv(B, block_b))
    if n_tiles == 1 and B > 256:
        n_tiles = 2
    best = None
    for align in (256, 128, 8):
        tb = _round_up(_cdiv(B, n_tiles), align)
        bp = _round_up(B, tb)
        key = (bp, -align)  # smallest padding first, larger alignment on ties
        if best is None or key < best[0]:
            best = (key, tb, bp)
    _, TB, Bp = best
    return TB, Bp


def mlp_decoder_forward(z, w1, b1, w2, b2, *, block_b=1024,
                        logits_dtype=jnp.bfloat16):
    """z: [B, Z_DIM] f32; w1: [Z_DIM, HIDDEN] bf16; b1: [1, HIDDEN] f32;
    w2: [HIDDEN, OUT_DIM] bf16; b2: [1, OUT_DIM] f32  ->  [B, 1, 28, 28] f32."""
    B = z.shape[0]
    TB, Bp = _choose_batch_tile(B, block_b)
    if Bp != B:
        z = jnp.pad(z, ((0, Bp - B), (0, 0)))
    grid = (Bp // TB,)

    out_bytes = jnp.dtype(logits_dtype).itemsize
    cost = pl.CostEstimate(
        flops=2 * Bp * (Z_DIM * HIDDEN + HIDDEN * OUT_DIM),
        bytes_accessed=(
            Bp * Z_DIM * 4                 # z (f32)
            + Z_DIM * HIDDEN * 2           # w1 (bf16)
            + HIDDEN * 4                   # b1 (f32)
            + HIDDEN * OUT_DIM * 2         # w2 (bf16)
            + OUT_DIM * 4                  # b2 (f32)
            + Bp * OUT_DIM * out_bytes     # out (bf16) -- dominant at large B
        ),
        transcendentals=0,
    )

    def build_call(single_buffer_weights):
        def resident(shape):
            # Constant index map -> fetched once, held in VMEM across the grid.
            if single_buffer_weights:
                return pl.BlockSpec(shape, lambda i: (0, 0),
                                    pipeline_mode=pl.Buffered(1))
            return pl.BlockSpec(shape, lambda i: (0, 0))

        return pl.pallas_call(
            mlp_decoder_kernel,
            out_shape=jax.ShapeDtypeStruct((Bp, OUT_DIM), logits_dtype),
            grid=grid,
            in_specs=[
                pl.BlockSpec((TB, Z_DIM), lambda i: (i, 0)),   # streamed per tile
                resident((Z_DIM, HIDDEN)),
                resident((1, HIDDEN)),
                resident((HIDDEN, OUT_DIM)),
                resident((1, OUT_DIM)),
            ],
            out_specs=pl.BlockSpec((TB, OUT_DIM), lambda i: (i, 0)),
            compiler_params=pltpu.CompilerParams(
                # Batch tiles are independent -> megacore sharding on v7x.
                dimension_semantics=("parallel",),
                # Explicit budget: safe for TB<=1024 on v5e's 16 MiB scoped
                # default, and leaves headroom on v7x's 64 MiB physical VMEM.
                vmem_limit_bytes=32 * 1024 * 1024,
            ),
            cost_estimate=cost,
        )

    single_buffer = hasattr(pl, "Buffered")
    try:
        flat = build_call(single_buffer)(z, w1, b1, w2, b2)
    except Exception:
        if not single_buffer:
            raise
        # Fallback if this JAX build rejects pipeline_mode=pl.Buffered(1).
        flat = build_call(False)(z, w1, b1, w2, b2)

    # Drop padded batch rows BEFORE any use, then upcast + reshape in plain JAX.
    flat = flat[:B].astype(jnp.float32)
    return flat.reshape(B, *OUTPUT_SHAPE)


def init_params(key):
    """PyTorch nn.Linear-style init U(-1/sqrt(fan_in), 1/sqrt(fan_in)).
    Weights are stored in bf16 (HBM traffic), biases stay f32."""
    k1, k2, k3, k4 = jax.random.split(key, 4)
    bound1 = 1.0 / np.sqrt(Z_DIM)
    bound2 = 1.0 / np.sqrt(HIDDEN)
    w1 = jax.random.uniform(k1, (Z_DIM, HIDDEN), jnp.float32, -bound1, bound1)
    b1 = jax.random.uniform(k2, (1, HIDDEN), jnp.float32, -bound1, bound1)
    w2 = jax.random.uniform(k3, (HIDDEN, OUT_DIM), jnp.float32, -bound2, bound2)
    b2 = jax.random.uniform(k4, (1, OUT_DIM), jnp.float32, -bound2, bound2)
    return w1.astype(jnp.bfloat16), b1, w2.astype(jnp.bfloat16), b2


if __name__ == "__main__":
    key = jax.random.PRNGKey(0)
    k_params, k_z = jax.random.split(key)
    w1, b1, w2, b2 = init_params(k_params)

    B = 8
    z = jax.random.normal(k_z, (B, Z_DIM), jnp.float32)

    x = mlp_decoder_forward(z, w1, b1, w2, b2)
    x = jax.block_until_ready(x)

    # Reference in f32 (weights upcast from their bf16 storage values).  The only
    # differences vs. the kernel are the bf16 casts of z / h and the bf16 logit
    # storage, hence the loose tolerance.
    w1f = w1.astype(jnp.float32)
    w2f = w2.astype(jnp.float32)
    h_ref = jnp.maximum(z @ w1f + b1, 0.0)
    x_ref = (h_ref @ w2f + b2).reshape(B, *OUTPUT_SHAPE)

    assert x.shape == (B, 1, 28, 28), x.shape
    np.testing.assert_allclose(np.asarray(x), np.asarray(x_ref), rtol=2e-2, atol=2e-2)

    print("KERNEL_OK")
</pallas_src>

<mosaic_0001>
module attributes {stable_mosaic.version = 11 : i64} {
  func.func @mlp_decoder_kernel(%arg0: i32, %arg1: memref<8x20xf32, #tpu.memory_space<vmem>>, %arg2: memref<20x512xbf16, #tpu.memory_space<vmem>>, %arg3: memref<1x512xf32, #tpu.memory_space<vmem>>, %arg4: memref<512x784xbf16, #tpu.memory_space<vmem>>, %arg5: memref<1x784xf32, #tpu.memory_space<vmem>>, %arg6: memref<8x784xbf16, #tpu.memory_space<vmem>>) attributes {dimension_semantics = [#tpu.dimension_semantics<parallel>], iteration_bounds = array<i64: 1>, scalar_prefetch = 0 : i64, scratch_operands = 0 : i64, tpu.core_type = #tpu.core_type<tc>, window_params = [{transform_indices = @transform_0, window_bounds = array<i64: 8, 20>}, {pipeline_mode = #tpu.pipeline_mode<synchronous>, transform_indices = @transform_1, window_bounds = array<i64: 20, 512>}, {pipeline_mode = #tpu.pipeline_mode<synchronous>, transform_indices = @transform_2, window_bounds = array<i64: 1, 512>}, {pipeline_mode = #tpu.pipeline_mode<synchronous>, transform_indices = @transform_3, window_bounds = array<i64: 512, 784>}, {pipeline_mode = #tpu.pipeline_mode<synchronous>, transform_indices = @transform_4, window_bounds = array<i64: 1, 784>}, {transform_indices = @transform_5, window_bounds = array<i64: 8, 784>}]} {
    %c0 = arith.constant 0 : index
    %c0_0 = arith.constant 0 : index
    %0 = vector.load %arg1[%c0, %c0_0] : memref<8x20xf32, #tpu.memory_space<vmem>>, vector<8x20xf32>
    %1 = arith.truncf %0 : vector<8x20xf32> to vector<8x20xbf16>
    %c0_1 = arith.constant 0 : index
    %c0_2 = arith.constant 0 : index
    %2 = vector.load %arg2[%c0_1, %c0_2] : memref<20x512xbf16, #tpu.memory_space<vmem>>, vector<20x512xbf16>
    %cst = arith.constant dense<0.000000e+00> : vector<8x512xf32>
    %3 = tpu.matmul %1, %2, %cst {dimension_numbers = #tpu.dot_dimension_numbers<[1], [0], [0], [1], [0, 0, 1, 1], [], []>} : vector<8x20xbf16>, vector<20x512xbf16>, vector<8x512xf32> -> vector<8x512xf32>
    %c0_3 = arith.constant 0 : index
    %c0_4 = arith.constant 0 : index
    %4 = vector.load %arg3[%c0_3, %c0_4] : memref<1x512xf32, #tpu.memory_space<vmem>>, vector<1x512xf32>
    %5 = vector.broadcast %4 : vector<1x512xf32> to vector<8x512xf32>
    %6 = arith.addf %3, %5 : vector<8x512xf32>
    %cst_5 = arith.constant 0.000000e+00 : f32
    %7 = vector.broadcast %cst_5 : f32 to vector<8x512xf32>
    %8 = arith.maximumf %6, %7 : vector<8x512xf32>
    %9 = arith.truncf %8 : vector<8x512xf32> to vector<8x512xbf16>
    %c0_6 = arith.constant 0 : index
    %c0_7 = arith.constant 0 : index
    %10 = vector.load %arg4[%c0_6, %c0_7] : memref<512x784xbf16, #tpu.memory_space<vmem>>, vector<512x784xbf16>
    %cst_8 = arith.constant dense<0.000000e+00> : vector<8x784xf32>
    %11 = tpu.matmul %9, %10, %cst_8 {dimension_numbers = #tpu.dot_dimension_numbers<[1], [0], [0], [1], [0, 0, 1, 1], [], []>} : vector<8x512xbf16>, vector<512x784xbf16>, vector<8x784xf32> -> vector<8x784xf32>
    %c0_9 = arith.constant 0 : index
    %c0_10 = arith.constant 0 : index
    %12 = vector.load %arg5[%c0_9, %c0_10] : memref<1x784xf32, #tpu.memory_space<vmem>>, vector<1x784xf32>
    %13 = vector.broadcast %12 : vector<1x784xf32> to vector<8x784xf32>
    %14 = arith.addf %11, %13 : vector<8x784xf32>
    %15 = arith.truncf %14 : vector<8x784xf32> to vector<8x784xbf16>
    %c0_11 = arith.constant 0 : index
    %c0_12 = arith.constant 0 : index
    %16 = vector.load %arg6[%c0_11, %c0_12] : memref<8x784xbf16, #tpu.memory_space<vmem>>, vector<8x784xbf16>
    tpu.vector_store %arg6[%c0_11, %c0_12], %15 {strides = array<i32>} : memref<8x784xbf16, #tpu.memory_space<vmem>>, vector<8x784xbf16>,
    return
  }
  func.func @transform_0(%arg0: i32) -> (i32, i32) {
    %c0_i32 = arith.constant 0 : i32
    %c0_i32_0 = arith.constant 0 : i32
    return %arg0, %c0_i32 : i32, i32
  }
  func.func @transform_1(%arg0: i32) -> (i32, i32) {
    %c0_i32 = arith.constant 0 : i32
    %c0_i32_0 = arith.constant 0 : i32
    %c0_i32_1 = arith.constant 0 : i32
    return %c0_i32, %c0_i32_0 : i32, i32
  }
  func.func @transform_2(%arg0: i32) -> (i32, i32) {
    %c0_i32 = arith.constant 0 : i32
    %c0_i32_0 = arith.constant 0 : i32
    %c0_i32_1 = arith.constant 0 : i32
    return %c0_i32, %c0_i32_0 : i32, i32
  }
  func.func @transform_3(%arg0: i32) -> (i32, i32) {
    %c0_i32 = arith.constant 0 : i32
    %c0_i32_0 = arith.constant 0 : i32
    %c0_i32_1 = arith.constant 0 : i32
    return %c0_i32, %c0_i32_0 : i32, i32
  }
  func.func @transform_4(%arg0: i32) -> (i32, i32) {
    %c0_i32 = arith.constant 0 : i32
    %c0_i32_0 = arith.constant 0 : i32
    %c0_i32_1 = arith.constant 0 : i32
    return %c0_i32, %c0_i32_0 : i32, i32
  }
  func.func @transform_5(%arg0: i32) -> (i32, i32) {
    %c0_i32 = arith.constant 0 : i32
    %c0_i32_0 = arith.constant 0 : i32
    return %arg0, %c0_i32 : i32, i32
  }
}

module attributes {stable_mosaic.version = 11 : i64} {
  func.func @mlp_decoder_kernel(%arg0: i32, %arg1: memref<8x20xf32, #tpu.memory_space<vmem>>, %arg2: memref<20x512xbf16, #tpu.memory_space<vmem>>, %arg3: memref<1x512xf32, #tpu.memory_space<vmem>>, %arg4: memref<512x784xbf16, #tpu.memory_space<vmem>>, %arg5: memref<1x784xf32, #tpu.memory_space<vmem>>, %arg6: memref<8x784xbf16, #tpu.memory_space<vmem>>) attributes {dimension_semantics = [#tpu.dimension_semantics<parallel>], iteration_bounds = array<i64: 1>, scalar_prefetch = 0 : i64, scratch_operands = 0 : i64, tpu.core_type = #tpu.core_type<tc>, window_params = [{transform_indices = @transform_0, window_bounds = array<i64: 8, 20>}, {pipeline_mode = #tpu.pipeline_mode<synchronous>, transform_indices = @transform_1, window_bounds = array<i64: 20, 512>}, {pipeline_mode = #tpu.pipeline_mode<synchronous>, transform_indices = @transform_2, window_bounds = array<i64: 1, 512>}, {pipeline_mode = #tpu.pipeline_mode<synchronous>, transform_indices = @transform_3, window_bounds = array<i64: 512, 784>}, {pipeline_mode = #tpu.pipeline_mode<synchronous>, transform_indices = @transform_4, window_bounds = array<i64: 1, 784>}, {transform_indices = @transform_5, window_bounds = array<i64: 8, 784>}]} {
    %c0 = arith.constant 0 : index
    %c0_0 = arith.constant 0 : index
    %0 = vector.load %arg1[%c0, %c0_0] : memref<8x20xf32, #tpu.memory_space<vmem>>, vector<8x20xf32>
    %1 = arith.truncf %0 : vector<8x20xf32> to vector<8x20xbf16>
    %c0_1 = arith.constant 0 : index
    %c0_2 = arith.constant 0 : index
    %2 = vector.load %arg2[%c0_1, %c0_2] : memref<20x512xbf16, #tpu.memory_space<vmem>>, vector<20x512xbf16>
    %cst = arith.constant dense<0.000000e+00> : vector<8x512xf32>
    %3 = tpu.matmul %1, %2, %cst {dimension_numbers = #tpu.dot_dimension_numbers<[1], [0], [0], [1], [0, 0, 1, 1], [], []>} : vector<8x20xbf16>, vector<20x512xbf16>, vector<8x512xf32> -> vector<8x512xf32>
    %c0_3 = arith.constant 0 : index
    %c0_4 = arith.constant 0 : index
    %4 = vector.load %arg3[%c0_3, %c0_4] : memref<1x512xf32, #tpu.memory_space<vmem>>, vector<1x512xf32>
    %5 = vector.broadcast %4 : vector<1x512xf32> to vector<8x512xf32>
    %6 = arith.addf %3, %5 : vector<8x512xf32>
    %cst_5 = arith.constant 0.000000e+00 : f32
    %7 = vector.broadcast %cst_5 : f32 to vector<8x512xf32>
    %8 = arith.maximumf %6, %7 : vector<8x512xf32>
    %9 = arith.truncf %8 : vector<8x512xf32> to vector<8x512xbf16>
    %c0_6 = arith.constant 0 : index
    %c0_7 = arith.constant 0 : index
    %10 = vector.load %arg4[%c0_6, %c0_7] : memref<512x784xbf16, #tpu.memory_space<vmem>>, vector<512x784xbf16>
    %cst_8 = arith.constant dense<0.000000e+00> : vector<8x784xf32>
    %11 = tpu.matmul %9, %10, %cst_8 {dimension_numbers = #tpu.dot_dimension_numbers<[1], [0], [0], [1], [0, 0, 1, 1], [], []>} : vector<8x512xbf16>, vector<512x784xbf16>, vector<8x784xf32> -> vector<8x784xf32>
    %c0_9 = arith.constant 0 : index
    %c0_10 = arith.constant 0 : index
    %12 = vector.load %arg5[%c0_9, %c0_10] : memref<1x784xf32, #tpu.memory_space<vmem>>, vector<1x784xf32>
    %13 = vector.broadcast %12 : vector<1x784xf32> to vector<8x784xf32>
    %14 = arith.addf %11, %13 : vector<8x784xf32>
    %15 = arith.truncf %14 : vector<8x784xf32> to vector<8x784xbf16>
    %c0_11 = arith.constant 0 : index
    %c0_12 = arith.constant 0 : index
    %16 = vector.load %arg6[%c0_11, %c0_12] : memref<8x784xbf16, #tpu.memory_space<vmem>>, vector<8x784xbf16>
    tpu.vector_store %arg6[%c0_11, %c0_12], %15 {strides = array<i32>} : memref<8x784xbf16, #tpu.memory_space<vmem>>, vector<8x784xbf16>,
    return
  }
  func.func @transform_0(%arg0: i32) -> (i32, i32) {
    %c0_i32 = arith.constant 0 : i32
    %c0_i32_0 = arith.constant 0 : i32
    return %arg0, %c0_i32 : i32, i32
  }
  func.func @transform_1(%arg0: i32) -> (i32, i32) {
    %c0_i32 = arith.constant 0 : i32
    %c0_i32_0 = arith.constant 0 : i32
    %c0_i32_1 = arith.constant 0 : i32
    return %c0_i32, %c0_i32_0 : i32, i32
  }
  func.func @transform_2(%arg0: i32) -> (i32, i32) {
    %c0_i32 = arith.constant 0 : i32
    %c0_i32_0 = arith.constant 0 : i32
    %c0_i32_1 = arith.constant 0 : i32
    return %c0_i32, %c0_i32_0 : i32, i32
  }
  func.func @transform_3(%arg0: i32) -> (i32, i32) {
    %c0_i32 = arith.constant 0 : i32
    %c0_i32_0 = arith.constant 0 : i32
    %c0_i32_1 = arith.constant 0 : i32
    return %c0_i32, %c0_i32_0 : i32, i32
  }
  func.func @transform_4(%arg0: i32) -> (i32, i32) {
    %c0_i32 = arith.constant 0 : i32
    %c0_i32_0 = arith.constant 0 : i32
    %c0_i32_1 = arith.constant 0 : i32
    return %c0_i32, %c0_i32_0 : i32, i32
  }
  func.func @transform_5(%arg0: i32) -> (i32, i32) {
    %c0_i32 = arith.constant 0 : i32
    %c0_i32_0 = arith.constant 0 : i32
    return %arg0, %c0_i32 : i32, i32
  }
}

</mosaic_0001>

<bundles_post_ra>
// kernel: tpu_custom_call.1
= control target key start
LH: loop header
LB: loop body
LE: loop exit
PB: predicated region body
PF: predicated region fallthrough
CT: control target
= control target key end

     0   :  { %vm86_vm0 = vcmask 1041408   ;;  %v2670_v3 = vmov 0   ;;  %vm82_vm1 = vcmask 162816   ;;  %s3477_s0 = inlined_call_operand.vmem [shape: f32[8,20], index: 0, kind: input, shape index: {}]   ;;  %s3478_s1 = inlined_call_operand.vmem [shape: bf16[20,512], index: 1, kind: input, shape index: {}]   ;;  %s3479_s2 = inlined_call_operand.vmem [shape: f32[1,512], index: 2, kind: input, shape index: {}]   ;;  %s3480_s3 = inlined_call_operand.vmem [shape: bf16[512,784], index: 3, kind: input, shape index: {}]   ;;  %s3481_s4 = inlined_call_operand.vmem [shape: f32[1,784], index: 4, kind: input, shape index: {}]   ;;  %s3482_s5 = inlined_call_operand.hbm [shape: bf16[8,784], index: 5, kind: output, shape index: {}]  }
   0x1   :  { %v2316_v0 = vld [vmem:[%s3478_s1 + $0x4] ss:$16 sps:$4 sm:$0xff]   ;;  %v2318_v1 = vld [vmem:[%s3478_s1] ss:$16 sps:$4 sm:$0xff]   ;;  %131 = vmatprep.mubr.bf16.mxu1 %v2670_v3  ;;  %v2323_v7 = vld [vmem:[%s3478_s1 + $0xc] ss:$16 sps:$4 sm:$0xff]  }
   0x2   :  { %v28_v2 = vld [vmem:[%s3478_s1 + $0x20] sm:$0x33]  ;;  %99 = vmatprep.subr.bf16.mxu1 %v2316_v0  ;;  %v2321_v10 = vld [vmem:[%s3478_s1 + $0x8] ss:$16 sps:$4 sm:$0xff]   ;;  %v2338_v18 = vld [vmem:[%s3480_s3 + $0x74] ss:$28 sps:$4 sm:$0xff]  }
   0x3   :  { %v2013_v4 = vcombine.high %v28_v2, %v28_v2  ;;  %v2012_v5 = vcombine.low %v28_v2, %v28_v2  ;;  %100 = vmatpush1.bf16.msra.mxu1 %v2318_v1  ;;  %v22_v6 = vld [vmem:[%s3477_s0] sm:$0xff]  ;;  %v29_v11 = vld [vmem:[%s3478_s1 + $0x28] sm:$0x33]  ;;  %v2332_v14 = vld [vmem:[%s3480_s3 + $0x3c] ss:$28 sps:$4 sm:$0xff]  }
   0x4   :  { %v2326_v9 = vld [vmem:[%s3480_s3 + $0x4] ss:$28 sps:$4 sm:$0xff]   ;;  %v23_v12 = vpack.c.bf16 %v22_v6, %v22_v6  ;;  %v2015_v15 = vcombine.high %v29_v11, %v29_v11  ;;  %v2014_v16 = vcombine.low %v29_v11, %v29_v11  ;;  %v2337_v17 = vld [vmem:[%s3480_s3 + $0x38] ss:$28 sps:$4 sm:$0xff]   ;;  %v2330_v19 = vld [vmem:[%s3480_s3 + $0xc] ss:$28 sps:$4 sm:$0xff]  }
   0x5   :  { %2016 = vmatprep.subr.msk.bf16.mxu1 %vm86_vm0, %v2013_v4  ;;  %v88_v8 = vsel %vm86_vm0, %v2012_v5, 0  ;;  %1634 = vmatprep.subr.bf16.mxu0 %v2326_v9  ;;  %v2331_v13 = vld [vmem:[%s3480_s3] ss:$28 sps:$4 sm:$0xff]   ;;  %v2343_v21 = vld [vmem:[%s3480_s3 + $0x70] ss:$28 sps:$4 sm:$0xff]  }
   0x6   :  { %1635 = vmatpush1.bf16.msra.mxu0 %v2331_v13  ;;  %v94_v20 = vsel %vm86_vm0, %v2014_v16, 0  ;;  %v2344_v22 = vld [vmem:[%s3480_s3 + $0xac] ss:$28 sps:$4 sm:$0xff]   ;;  %v2336_v24 = vld [vmem:[%s3480_s3 + $0x44] ss:$28 sps:$4 sm:$0xff]  }
   0x7   :  { %102 = vmatpush1.bf16.msra.mxu1 %v88_v8  ;;  %1636 = vmatprep.subr.bf16.mxu0 %v2332_v14  ;;  %v2328_v23 = vld [vmem:[%s3480_s3 + $0x8] ss:$28 sps:$4 sm:$0xff]   ;;  %v2334_v27 = vld [vmem:[%s3480_s3 + $0x40] ss:$28 sps:$4 sm:$0xff]   ;;  %v2340_v31 = vld [vmem:[%s3480_s3 + $0x78] ss:$28 sps:$4 sm:$0xff]  }
   0x8   :  { %140 = vmatprep.subr.bf16.mxu1 %v2323_v7  ;;  %v2349_v25 = vld [vmem:[%s3480_s3 + $0xa8] ss:$28 sps:$4 sm:$0xff]   ;;  %v2342_v28 = vld [vmem:[%s3480_s3 + $0x7c] ss:$28 sps:$4 sm:$0xff]   ;;  %v2348_v32 = vld [vmem:[%s3480_s3 + $0xb4] ss:$28 sps:$4 sm:$0xff]  }
   0x9   :  { %v2350_v26 = vld [vmem:[%s3480_s3 + $0xe4] ss:$28 sps:$4 sm:$0xff]   ;;  %v2356_v30 = vld [vmem:[%s3480_s3 + $0x11c] ss:$28 sps:$4 sm:$0xff]   ;;  %v2362_v34 = vld [vmem:[%s3480_s3 + $0x154] ss:$28 sps:$4 sm:$0xff]  }
   0xa   :  { %2017 = vmatmul.mubr.msk.bf16.vlgmr.msra.gmra.mrb[0].mxu1 %vm82_vm1, %v23_v12  ;;  %1637 = vmatpush1.bf16.msra.mxu0 %v2337_v17  ;;  %v2355_v29 = vld [vmem:[%s3480_s3 + $0xe0] ss:$28 sps:$4 sm:$0xff]   ;;  %v2361_v33 = vld [vmem:[%s3480_s3 + $0x118] ss:$28 sps:$4 sm:$0xff]   ;;  %v2346_v35 = vld [vmem:[%s3480_s3 + $0xb0] ss:$28 sps:$4 sm:$0xff]  }
   0xb   :  { %141 = vmatpush1.bf16.msra.mxu1 %v2321_v10  ;;  %172 = vmatprep.mubr.bf16.mxu1 %v2670_v3  ;;  %v2354_v36 = vld [vmem:[%s3480_s3 + $0xec] ss:$28 sps:$4 sm:$0xff]   ;;  %v2360_v40 = vld [vmem:[%s3480_s3 + $0x124] ss:$28 sps:$4 sm:$0xff]   ;;  %v2366_v44 = vld [vmem:[%s3480_s3 + $0x15c] ss:$28 sps:$4 sm:$0xff]  }
   0xc   :  { %2018 = vmatprep.subr.msk.bf16.mxu1 %vm86_vm0, %v2015_v15  ;;  %1638 = vmatprep.subr.bf16.mxu0 %v2338_v18  ;;  %v2367_v37 = vld [vmem:[%s3480_s3 + $0x150] ss:$28 sps:$4 sm:$0xff]   ;;  %v2352_v39 = vld [vmem:[%s3480_s3 + $0xe8] ss:$28 sps:$4 sm:$0xff]   ;;  %v2358_v43 = vld [vmem:[%s3480_s3 + $0x120] ss:$28 sps:$4 sm:$0xff]  }
   0xd   :  { %v2368_v38 = vld [vmem:[%s3480_s3 + $0x18c] ss:$28 sps:$4 sm:$0xff]   ;;  %v2374_v42 = vld [vmem:[%s3480_s3 + $0x1c4] ss:$28 sps:$4 sm:$0xff]   ;;  %v2380_v46 = vld [vmem:[%s3480_s3 + $0x1fc] ss:$28 sps:$4 sm:$0xff]  }
   0xe   :  { %1639 = vmatpush1.bf16.msra.mxu0 %v2343_v21  ;;  %v2373_v41 = vld [vmem:[%s3480_s3 + $0x188] ss:$28 sps:$4 sm:$0xff]   ;;  %v2379_v45 = vld [vmem:[%s3480_s3 + $0x1c0] ss:$28 sps:$4 sm:$0xff]   ;;  %v2364_v47 = vld [vmem:[%s3480_s3 + $0x158] ss:$28 sps:$4 sm:$0xff]  }
   0xf   :  { %143 = vmatpush1.bf16.msra.mxu1 %v94_v20  ;;  %1640 = vmatprep.subr.bf16.mxu0 %v2344_v22  ;;  %v2372_v48 = vld [vmem:[%s3480_s3 + $0x194] ss:$28 sps:$4 sm:$0xff]   ;;  %v2378_v52 = vld [vmem:[%s3480_s3 + $0x1cc] ss:$28 sps:$4 sm:$0xff]   ;;  %v2384_v56 = vld [vmem:[%s3480_s3 + $0x204] ss:$28 sps:$4 sm:$0xff]  }
  0x10   :  { %1716 = vmatprep.subr.bf16.mxu1 %v2330_v19  ;;  %v2385_v49 = vld [vmem:[%s3480_s3 + $0x1f8] ss:$28 sps:$4 sm:$0xff]   ;;  %v2370_v50 = vld [vmem:[%s3480_s3 + $0x190] ss:$28 sps:$4 sm:$0xff]   ;;  %v2376_v55 = vld [vmem:[%s3480_s3 + $0x1c8] ss:$28 sps:$4 sm:$0xff]  }
  0x11   :  { %v2386_v51 = vld [vmem:[%s3480_s3 + $0x234] ss:$28 sps:$4 sm:$0xff]   ;;  %v2392_v54 = vld [vmem:[%s3480_s3 + $0x26c] ss:$28 sps:$4 sm:$0xff]   ;;  %v2398_v58 = vld [vmem:[%s3480_s3 + $0x2a4] ss:$28 sps:$4 sm:$0xff]  }
  0x12   :  { %2019 = vmatmul.mubr.msk.bf16.vlgmr.msra.gmra.mrb[4].mxu1 %vm82_vm1, %v23_v12  ;;  %1641 = vmatpush1.bf16.msra.mxu0 %v2349_v25  ;;  %v2391_v53 = vld [vmem:[%s3480_s3 + $0x230] ss:$28 sps:$4 sm:$0xff]   ;;  %v2397_v57 = vld [vmem:[%s3480_s3 + $0x268] ss:$28 sps:$4 sm:$0xff]   ;;  %v2382_v59 = vld [vmem:[%s3480_s3 + $0x200] ss:$28 sps:$4 sm:$0xff]  }
  0x13   :  { %1717 = vmatpush1.bf16.msra.mxu1 %v2328_v23  ;;  %1642 = vmatprep.subr.bf16.mxu0 %v2350_v26  ;;  %v2390_v60 = vld [vmem:[%s3480_s3 + $0x23c] ss:$28 sps:$4 sm:$0xff]   ;;  %v2396_v0 = vld [vmem:[%s3480_s3 + $0x274] ss:$28 sps:$4 sm:$0xff]   ;;  %v2402_v3 = vld [vmem:[%s3480_s3 + $0x2ac] ss:$28 sps:$4 sm:$0xff]  }
  0x14   :  { %1718 = vmatprep.subr.bf16.mxu1 %v2336_v24  ;;  %v2403_v61 = vld [vmem:[%s3480_s3 + $0x2a0] ss:$28 sps:$4 sm:$0xff]   ;;  %v2388_v63 = vld [vmem:[%s3480_s3 + $0x238] ss:$28 sps:$4 sm:$0xff]   ;;  %v2394_v2 = vld [vmem:[%s3480_s3 + $0x270] ss:$28 sps:$4 sm:$0xff]  }
  0x15   :  { %v2404_v62 = vld [vmem:[%s3480_s3 + $0x2dc] ss:$28 sps:$4 sm:$0xff]   ;;  %v2400_v4 = vld [vmem:[%s3480_s3 + $0x2a8] ss:$28 sps:$4 sm:$0xff]   ;;  %v2410_v7 = vld [vmem:[%s3480_s3 + $0x314] ss:$28 sps:$4 sm:$0xff]  }
  0x16   :  { %1643 = vmatpush1.bf16.msra.mxu0 %v2355_v29  ;;  %v2409_v1 = vld [vmem:[%s3480_s3 + $0x2d8] ss:$28 sps:$4 sm:$0xff]   ;;  %v2408_v5 = vld [vmem:[%s3480_s3 + $0x2e4] ss:$28 sps:$4 sm:$0xff]   ;;  %v2415_v10 = vld [vmem:[%s3480_s3 + $0x310] ss:$28 sps:$4 sm:$0xff]  }
  0x17   :  { %1719 = vmatpush1.bf16.msra.mxu1 %v2334_v27  ;;  %1644 = vmatprep.subr.bf16.mxu0 %v2356_v30  ;;  %v2406_v6 = vld [vmem:[%s3480_s3 + $0x2e0] ss:$28 sps:$4 sm:$0xff]   ;;  %v2412_v9 = vld [vmem:[%s3480_s3 + $0x318] ss:$28 sps:$4 sm:$0xff]   ;;  %v2416_v11 = vld [vmem:[%s3480_s3 + $0x34c] ss:$28 sps:$4 sm:$0xff]  }
  0x18   :  { %1720 = vmatprep.subr.bf16.mxu1 %v2342_v28  ;;  %v2414_v8 = vld [vmem:[%s3480_s3 + $0x31c] ss:$28 sps:$4 sm:$0xff]   ;;  %v2420_v12 = vld [vmem:[%s3480_s3 + $0x354] ss:$28 sps:$4 sm:$0xff]   ;;  %v2421_v14 = vld [vmem:[%s3480_s3 + $0x348] ss:$28 sps:$4 sm:$0xff]  }
  0x19   :  { %v2418_v13 = vld [vmem:[%s3480_s3 + $0x350] ss:$28 sps:$4 sm:$0xff]   ;;  %v2424_v15 = vld [vmem:[%s3480_s3 + $0x384] ss:$28 sps:$4 sm:$0xff]  }
  0x1a   :  { %1645 = vmatpush1.bf16.msra.mxu0 %v2361_v33  ;;  %v2427_v16 = vld [vmem:[%s3480_s3 + $0x38c] ss:$28 sps:$4 sm:$0xff]  }
  0x1b   :  { %1721 = vmatpush1.bf16.msra.mxu1 %v2340_v31  ;;  %1646 = vmatprep.subr.bf16.mxu0 %v2362_v34 }
  0x1c   :  { %1722 = vmatprep.subr.bf16.mxu1 %v2348_v32 }
  0x1e   :  { %1647 = vmatpush1.bf16.msra.mxu0 %v2367_v37 }
  0x1f   :  { %1723 = vmatpush1.bf16.msra.mxu1 %v2346_v35  ;;  %1648 = vmatprep.subr.bf16.mxu0 %v2368_v38 }
  0x20   :  { %1724 = vmatprep.subr.bf16.mxu1 %v2354_v36 }
  0x22   :  { %1649 = vmatpush1.bf16.msra.mxu0 %v2373_v41 }
  0x23   :  { %1725 = vmatpush1.bf16.msra.mxu1 %v2352_v39  ;;  %1650 = vmatprep.subr.bf16.mxu0 %v2374_v42 }
  0x24   :  { %1726 = vmatprep.subr.bf16.mxu1 %v2360_v40 }
  0x26   :  { %1651 = vmatpush1.bf16.msra.mxu0 %v2379_v45 }
  0x27   :  { %1727 = vmatpush1.bf16.msra.mxu1 %v2358_v43  ;;  %1652 = vmatprep.subr.bf16.mxu0 %v2380_v46 }
  0x28   :  { %1728 = vmatprep.subr.bf16.mxu1 %v2366_v44 }
  0x2a   :  { %1653 = vmatpush1.bf16.msra.mxu0 %v2385_v49 }
  0x2b   :  { %1729 = vmatpush1.bf16.msra.mxu1 %v2364_v47  ;;  %1654 = vmatprep.subr.bf16.mxu0 %v2386_v51 }
  0x2c   :  { %1730 = vmatprep.subr.bf16.mxu1 %v2372_v48 }
  0x2e   :  { %1655 = vmatpush1.bf16.msra.mxu0 %v2391_v53 }
  0x2f   :  { %1731 = vmatpush1.bf16.msra.mxu1 %v2370_v50  ;;  %1656 = vmatprep.subr.bf16.mxu0 %v2392_v54 }
  0x30   :  { %1732 = vmatprep.subr.bf16.mxu1 %v2378_v52 }
  0x32   :  { %1657 = vmatpush1.bf16.msra.mxu0 %v2397_v57 }
  0x33   :  { %1733 = vmatpush1.bf16.msra.mxu1 %v2376_v55  ;;  %1658 = vmatprep.subr.bf16.mxu0 %v2398_v58 }
  0x34   :  { %1734 = vmatprep.subr.bf16.mxu1 %v2384_v56 }
  0x36   :  { %1659 = vmatpush1.bf16.msra.mxu0 %v2403_v61 }
  0x37   :  { %1735 = vmatpush1.bf16.msra.mxu1 %v2382_v59  ;;  %1660 = vmatprep.subr.bf16.mxu0 %v2404_v62 }
  0x38   :  { %1736 = vmatprep.subr.bf16.mxu1 %v2390_v60 }
  0x3a   :  { %1661 = vmatpush1.bf16.msra.mxu0 %v2409_v1 }
  0x3b   :  { %1737 = vmatpush1.bf16.msra.mxu1 %v2388_v63  ;;  %1662 = vmatprep.subr.bf16.mxu0 %v2410_v7 }
  0x3c   :  { %1738 = vmatprep.subr.bf16.mxu1 %v2396_v0 }
  0x3e   :  { %1663 = vmatpush1.bf16.msra.mxu0 %v2415_v10 }
  0x3f   :  { %1739 = vmatpush1.bf16.msra.mxu1 %v2394_v2  ;;  %1664 = vmatprep.subr.bf16.mxu0 %v2416_v11 }
  0x40   :  { %1740 = vmatprep.subr.bf16.mxu1 %v2402_v3 }
  0x42   :  { %1665 = vmatpush1.bf16.msra.mxu0 %v2421_v14 }
  0x43   :  { %1741 = vmatpush1.bf16.msra.mxu1 %v2400_v4  ;;  %1675 = vmatprep.subr.bf16.mxu0 %v2424_v15 }
  0x44   :  { %1742 = vmatprep.subr.bf16.mxu1 %v2408_v5 }
  0x47   :  { %1743 = vmatpush1.bf16.msra.mxu1 %v2406_v6 }
  0x48   :  { %1744 = vmatprep.subr.bf16.mxu1 %v2414_v8 }
  0x4b   :  { %1745 = vmatpush1.bf16.msra.mxu1 %v2412_v9 }
  0x4c   :  { %1746 = vmatprep.subr.bf16.mxu1 %v2420_v12 }
  0x4f   :  { %1747 = vmatpush1.bf16.msra.mxu1 %v2418_v13 }
  0x50   :  { %1757 = vmatprep.subr.bf16.mxu1 %v2427_v16 }
  0x51   :  { %10 = vsyncpa [#allocation3], 0  ;;  %v32_v17 = vlaneseq  ;;  %v2933_v20 = vld [vmem:[%s3479_s2] sm:$0xf]  ;;  %v2425_v35 = vld [vmem:[%s3480_s3 + $0x388] ss:$28 sps:$4 sm:$0xff]  }
  0x52   :  { %v2422_v34 = vld [vmem:[%s3480_s3 + $0x380] ss:$28 sps:$4 sm:$0xff]   ;;  %v2428_v42 = vld [vmem:[%s3480_s3 + $0x3b8] ss:$28 sps:$4 sm:$0xff]   ;;  %v2434_v50 = vld [vmem:[%s3480_s3 + $0x3f0] ss:$28 sps:$4 sm:$0xff]  }
  0x53   :  { %v2927_v18 = vshrl.u32 %v32_v17, 7  ;;  %v2430_v38 = vld [vmem:[%s3480_s3 + $0x3bc] ss:$28 sps:$4 sm:$0xff]   ;;  %v2433_v39 = vld [vmem:[%s3480_s3 + $0x3c4] ss:$28 sps:$4 sm:$0xff]   ;;  %vm1992_vm2 = vcmask 125952  }
  0x54   :  { %v2431_v43 = vld [vmem:[%s3480_s3 + $0x3c0] ss:$28 sps:$4 sm:$0xff]   ;;  %v2436_v46 = vld [vmem:[%s3480_s3 + $0x3f4] ss:$28 sps:$4 sm:$0xff]   ;;  %v2442_v53 = vld [vmem:[%s3480_s3 + $0x42c] ss:$28 sps:$4 sm:$0xff]  }
  0x55   :  { %v34_v19 = vsub.s32 0, %v2927_v18  ;;  %v38_v21 = vsub.s32 1, %v2927_v18  ;;  %v46_v29 = vsub.s32 3, %v2927_v18  ;;  %v2439_v47 = vld [vmem:[%s3480_s3 + $0x3fc] ss:$28 sps:$4 sm:$0xff]  }
  0x56   :  { %v2437_v51 = vld [vmem:[%s3480_s3 + $0x3f8] ss:$28 sps:$4 sm:$0xff]   ;;  %v2440_v55 = vld [vmem:[%s3480_s3 + $0x428] ss:$28 sps:$4 sm:$0xff]   ;;  %v2443_v56 = vld [vmem:[%s3480_s3 + $0x430] ss:$28 sps:$4 sm:$0xff]  }
  0x57   :  { %v35_v22 = vrot.slane %v2933_v20, %v34_v19  ;;  %v39_v23 = vrot.slane %v2933_v20, %v38_v21  ;;  %v47_v36 = vrot.slane %v2933_v20, %v46_v29  ;;  %v2445_v54 = vld [vmem:[%s3480_s3 + $0x434] ss:$28 sps:$4 sm:$0xff]   ;;  %v2448_v57 = vld [vmem:[%s3480_s3 + $0x464] ss:$28 sps:$4 sm:$0xff]   ;;  %v2451_v58 = vld [vmem:[%s3480_s3 + $0x46c] ss:$28 sps:$4 sm:$0xff]  }
  0x58   :  { %v2446_v59 = vld [vmem:[%s3480_s3 + $0x460] ss:$28 sps:$4 sm:$0xff]   ;;  %v2449_v60 = vld [vmem:[%s3480_s3 + $0x468] ss:$28 sps:$4 sm:$0xff]   ;;  %v2452_v63 = vld [vmem:[%s3480_s3 + $0x498] ss:$28 sps:$4 sm:$0xff]  }
  0x59   :  { %v2454_v61 = vld [vmem:[%s3480_s3 + $0x49c] ss:$28 sps:$4 sm:$0xff]   ;;  %v2457_v62 = vld [vmem:[%s3480_s3 + $0x4a4] ss:$28 sps:$4 sm:$0xff]   ;;  %v2460_v1 = vld [vmem:[%s3480_s3 + $0x4d4] ss:$28 sps:$4 sm:$0xff]  }
  0x5a   :  { %v2455_v0 = vld [vmem:[%s3480_s3 + $0x4a0] ss:$28 sps:$4 sm:$0xff]   ;;  %v2458_v3 = vld [vmem:[%s3480_s3 + $0x4d0] ss:$28 sps:$4 sm:$0xff]   ;;  %v2461_v4 = vld [vmem:[%s3480_s3 + $0x4d8] ss:$28 sps:$4 sm:$0xff]  }
  0x5b   :  { %v2463_v2 = vld [vmem:[%s3480_s3 + $0x4dc] ss:$28 sps:$4 sm:$0xff]   ;;  %v2466_v5 = vld [vmem:[%s3480_s3 + $0x50c] ss:$28 sps:$4 sm:$0xff]   ;;  %v2469_v6 = vld [vmem:[%s3480_s3 + $0x514] ss:$28 sps:$4 sm:$0xff]  }
  0x5c   :  { %v2464_v7 = vld [vmem:[%s3480_s3 + $0x508] ss:$28 sps:$4 sm:$0xff]   ;;  %v2467_v8 = vld [vmem:[%s3480_s3 + $0x510] ss:$28 sps:$4 sm:$0xff]   ;;  %v2470_v11 = vld [vmem:[%s3480_s3 + $0x540] ss:$28 sps:$4 sm:$0xff]  }
  0x5d   :  { %v2472_v9 = vld [vmem:[%s3480_s3 + $0x544] ss:$28 sps:$4 sm:$0xff]   ;;  %v2475_v10 = vld [vmem:[%s3480_s3 + $0x54c] ss:$28 sps:$4 sm:$0xff]   ;;  %v2478_v13 = vld [vmem:[%s3480_s3 + $0x57c] ss:$28 sps:$4 sm:$0xff]  }
  0x5e   :  { %v2473_v12 = vld [vmem:[%s3480_s3 + $0x548] ss:$28 sps:$4 sm:$0xff]   ;;  %v2476_v15 = vld [vmem:[%s3480_s3 + $0x578] ss:$28 sps:$4 sm:$0xff]   ;;  %v2479_v16 = vld [vmem:[%s3480_s3 + $0x580] ss:$28 sps:$4 sm:$0xff]  }
  0x5f   :  { %v2481_v14 = vld [vmem:[%s3480_s3 + $0x584] ss:$28 sps:$4 sm:$0xff]   ;;  %v2484_v17 = vld [vmem:[%s3480_s3 + $0x5b4] ss:$28 sps:$4 sm:$0xff]  }
  0xdd   :  { %v133_v24 = vpop.f32.mrb[0].mxu1 }
  0xde   :  { %v134_v25 = vadd.f32 %v133_v24, %v35_v22  ;;  %v135_v26 = vpop.f32.mrb[1].mxu1  ;;  %v2487_v22 = vld [vmem:[%s3480_s3 + $0x5bc] ss:$28 sps:$4 sm:$0xff]  }
  0xdf   :  { %v136_v27 = vadd.f32 %v135_v26, %v39_v23  ;;  %v137_v28 = vpop.f32.mrb[2].mxu1  ;;  %v2482_v23 = vld [vmem:[%s3480_s3 + $0x5b0] ss:$28 sps:$4 sm:$0xff]   ;;  %v2485_v24 = vld [vmem:[%s3480_s3 + $0x5b8] ss:$28 sps:$4 sm:$0xff]  }
  0xe0   :  { %v181_v30 = vmax.f32 %v134_v25, 0.0  ;;  %v138_v31 = vpop.f32.mrb[3].mxu1  ;;  %v2490_v25 = vld [vmem:[%s3480_s3 + $0x5ec] ss:$28 sps:$4 sm:$0xff]   ;;  %v2493_v26 = vld [vmem:[%s3480_s3 + $0x5f4] ss:$28 sps:$4 sm:$0xff]  }
  0xe1   :  { %v182_v32 = vmax.f32 %v136_v27, 0.0  ;;  %v2488_v27 = vld [vmem:[%s3480_s3 + $0x5e8] ss:$28 sps:$4 sm:$0xff]   ;;  %v2491_v28 = vld [vmem:[%s3480_s3 + $0x5f0] ss:$28 sps:$4 sm:$0xff]  }
  0xe2   :  { %v2954_v37 = vpack.c.bf16 %v181_v30, %v181_v30  ;;  %v2496_v30 = vld [vmem:[%s3480_s3 + $0x624] ss:$28 sps:$4 sm:$0xff]   ;;  %v2499_v31 = vld [vmem:[%s3480_s3 + $0x62c] ss:$28 sps:$4 sm:$0xff]  }
  0xe3   :  { %v2943_v33 = vpack.c.bf16 %v182_v32, %v182_v32  ;;  %v42_v32 = vsub.s32 2, %v2927_v18 }
  0xe5   :  { %1666 = vmatprep.mubr.bf16.mxu0 %v2943_v33  ;;  %1748 = vmatprep.mubr.bf16.mxu1 %v2943_v33  ;;  %v2964_v40 = vpop.f32.mrb[4].mxu1 }
  0xe6   :  { %1667 = vmatmul.mubr.bf16.vlgmr.msra.gmra.mrb[0].mxu0 %v2954_v37  ;;  %1749 = vmatmul.mubr.bf16.vlgmr.msra.gmra.mrb[8].mxu1 %v2954_v37  ;;  %v176_v41 = vpop.f32.mrb[5].mxu1 }
  0xe7   :  { %1676 = vmatpush1.bf16.msra.mxu0 %v2422_v34  ;;  %1758 = vmatpush1.bf16.msra.mxu1 %v2425_v35  ;;  %v177_v44 = vadd.f32 %v176_v41, %v47_v36  ;;  %v178_v45 = vpop.f32.mrb[6].mxu1  ;;  %v2494_v34 = vld [vmem:[%s3480_s3 + $0x620] ss:$28 sps:$4 sm:$0xff]   ;;  %v2497_v35 = vld [vmem:[%s3480_s3 + $0x628] ss:$28 sps:$4 sm:$0xff]  }
  0xe8   :  { %1677 = vmatprep.subr.bf16.mxu0 %v2430_v38  ;;  %1759 = vmatprep.subr.bf16.mxu1 %v2433_v39  ;;  %v179_v48 = vpop.f32.mrb[7].mxu1  ;;  %v2502_v36 = vld [vmem:[%s3480_s3 + $0x65c] ss:$28 sps:$4 sm:$0xff]   ;;  %v2505_v38 = vld [vmem:[%s3480_s3 + $0x664] ss:$28 sps:$4 sm:$0xff]   ;;  %v43_v39 = vrot.slane %v2933_v20, %v42_v32 }
  0xe9   :  { %v184_v49 = vmax.f32 %v177_v44, 0.0  ;;  %v2500_v41 = vld [vmem:[%s3480_s3 + $0x658] ss:$28 sps:$4 sm:$0xff]   ;;  %v2506_v45 = vld [vmem:[%s3480_s3 + $0x690] ss:$28 sps:$4 sm:$0xff]  }
  0xea   :  { %v2511_v20 = vld [vmem:[%s3480_s3 + $0x69c] ss:$28 sps:$4 sm:$0xff]   ;;  %v175_v44 = vadd.f32 %v2964_v40, %v43_v39  ;;  %v2517_v40 = vld [vmem:[%s3480_s3 + $0x6d4] ss:$28 sps:$4 sm:$0xff]   ;;  %v2572_v39 = vld [vmem:[%s3480_s3 + $0x408] ss:$28 sps:$4 sm:$0xff]  }
  0xeb   :  { %1678 = vmatpush1.bf16.msra.mxu0 %v2428_v42  ;;  %1760 = vmatpush1.bf16.msra.mxu1 %v2431_v43  ;;  %v2986_v52 = vpack.c.bf16 %v184_v49, %v184_v49  ;;  %v2503_v42 = vld [vmem:[%s3480_s3 + $0x660] ss:$28 sps:$4 sm:$0xff]   ;;  %v2508_v43 = vld [vmem:[%s3480_s3 + $0x694] ss:$28 sps:$4 sm:$0xff]   ;;  %v2512_v49 = vld [vmem:[%s3480_s3 + $0x6c8] ss:$28 sps:$4 sm:$0xff]  }
  0xec   :  { %1679 = vmatprep.subr.bf16.mxu0 %v2436_v46  ;;  %1761 = vmatprep.subr.bf16.mxu1 %v2439_v47  ;;  %v2509_v46 = vld [vmem:[%s3480_s3 + $0x698] ss:$28 sps:$4 sm:$0xff]   ;;  %v2514_v47 = vld [vmem:[%s3480_s3 + $0x6cc] ss:$28 sps:$4 sm:$0xff]   ;;  %v183_v48 = vmax.f32 %v175_v44, 0.0 }
  0xed   :  { %1707 = vmatprep.mubr.bf16.mxu0 %v2986_v52  ;;  %1789 = vmatprep.mubr.bf16.mxu1 %v2986_v52  ;;  %v2580_v44 = vld [vmem:[%s3480_s3 + $0x2b4] ss:$28 sps:$4 sm:$0xff]  }
  0xef   :  { %1680 = vmatpush1.bf16.msra.mxu0 %v2434_v50  ;;  %1762 = vmatpush1.bf16.msra.mxu1 %v2437_v51  ;;  %v2515_v50 = vld [vmem:[%s3480_s3 + $0x6d0] ss:$28 sps:$4 sm:$0xff]  }
  0xf0   :  { %1681 = vmatprep.subr.bf16.mxu0 %v2442_v53  ;;  %1763 = vmatprep.subr.bf16.mxu1 %v2445_v54  ;;  %v2520_v51 = vld [vmem:[%s3480_s3 + $0x14] ss:$28 sps:$4 sm:$0xff]   ;;  %v3157_v54 = vpack.c.bf16 %v183_v48, %v183_v48 }
  0xf1   :  { %v2521_v53 = vld [vmem:[%s3480_s3 + $0x1d8] ss:$28 sps:$4 sm:$0xff]   ;;  %v2586_v48 = vld [vmem:[%s3480_s3 + $0x670] ss:$28 sps:$4 sm:$0xff]  }
  0xf3   :  { %1682 = vmatpush1.bf16.msra.mxu0 %v2440_v55  ;;  %1764 = vmatpush1.bf16.msra.mxu1 %v2443_v56  ;;  %v2518_v55 = vld [vmem:[%s3480_s3 + $0x10] ss:$28 sps:$4 sm:$0xff]   ;;  %v2522_v56 = vld [vmem:[%s3480_s3 + $0x18] ss:$28 sps:$4 sm:$0xff]  }
  0xf4   :  { %1683 = vmatprep.subr.bf16.mxu0 %v2448_v57  ;;  %1765 = vmatprep.subr.bf16.mxu1 %v2451_v58  ;;  %v2525_v57 = vld [vmem:[%s3480_s3 + $0x4c] ss:$28 sps:$4 sm:$0xff]  }
  0xf5   :  { %v2526_v58 = vld [vmem:[%s3480_s3 + $0x210] ss:$28 sps:$4 sm:$0xff]  }
  0xf7   :  { %1684 = vmatpush1.bf16.msra.mxu0 %v2446_v59  ;;  %1766 = vmatpush1.bf16.msra.mxu1 %v2449_v60  ;;  %v2523_v59 = vld [vmem:[%s3480_s3 + $0x48] ss:$28 sps:$4 sm:$0xff]   ;;  %v2527_v60 = vld [vmem:[%s3480_s3 + $0x50] ss:$28 sps:$4 sm:$0xff]  }
  0xf8   :  { %1685 = vmatprep.subr.bf16.mxu0 %v2454_v61  ;;  %1767 = vmatprep.subr.bf16.mxu1 %v2457_v62  ;;  %v2530_v61 = vld [vmem:[%s3480_s3 + $0x84] ss:$28 sps:$4 sm:$0xff]  }
  0xf9   :  { %v2531_v62 = vld [vmem:[%s3480_s3 + $0x248] ss:$28 sps:$4 sm:$0xff]  }
  0xfb   :  { %1686 = vmatpush1.bf16.msra.mxu0 %v2452_v63  ;;  %1768 = vmatpush1.bf16.msra.mxu1 %v2455_v0  ;;  %v2528_v63 = vld [vmem:[%s3480_s3 + $0x80] ss:$28 sps:$4 sm:$0xff]  }
  0xfc   :  { %1687 = vmatprep.subr.bf16.mxu0 %v2460_v1  ;;  %1769 = vmatprep.subr.bf16.mxu1 %v2463_v2  ;;  %v2535_v0 = vld [vmem:[%s3480_s3 + $0xbc] ss:$28 sps:$4 sm:$0xff]  }
  0xfd   :  { %v2536_v1 = vld [vmem:[%s3480_s3 + $0x280] ss:$28 sps:$4 sm:$0xff]   ;;  %v2533_v2 = vld [vmem:[%s3480_s3 + $0xb8] ss:$28 sps:$4 sm:$0xff]  }
  0xff   :  { %1688 = vmatpush1.bf16.msra.mxu0 %v2458_v3  ;;  %1770 = vmatpush1.bf16.msra.mxu1 %v2461_v4  ;;  %v2537_v3 = vld [vmem:[%s3480_s3 + $0xc0] ss:$28 sps:$4 sm:$0xff]   ;;  %v2540_v4 = vld [vmem:[%s3480_s3 + $0xf4] ss:$28 sps:$4 sm:$0xff]  }
 0x100   :  { %1689 = vmatprep.subr.bf16.mxu0 %v2466_v5  ;;  %1771 = vmatprep.subr.bf16.mxu1 %v2469_v6  ;;  %v2541_v5 = vld [vmem:[%s3480_s3 + $0x2b8] ss:$28 sps:$4 sm:$0xff]   ;;  %v2538_v6 = vld [vmem:[%s3480_s3 + $0xf0] ss:$28 sps:$4 sm:$0xff]  }
 0x103   :  { %1690 = vmatpush1.bf16.msra.mxu0 %v2464_v7  ;;  %1772 = vmatpush1.bf16.msra.mxu1 %v2467_v8  ;;  %v2542_v7 = vld [vmem:[%s3480_s3 + $0xf8] ss:$28 sps:$4 sm:$0xff]   ;;  %v2545_v8 = vld [vmem:[%s3480_s3 + $0x12c] ss:$28 sps:$4 sm:$0xff]  }
 0x104   :  { %1691 = vmatprep.subr.bf16.mxu0 %v2472_v9  ;;  %1773 = vmatprep.subr.bf16.mxu1 %v2475_v10  ;;  %v2546_v9 = vld [vmem:[%s3480_s3 + $0x2f0] ss:$28 sps:$4 sm:$0xff]   ;;  %v2543_v10 = vld [vmem:[%s3480_s3 + $0x128] ss:$28 sps:$4 sm:$0xff]  }
 0x107   :  { %1692 = vmatpush1.bf16.msra.mxu0 %v2470_v11  ;;  %1774 = vmatpush1.bf16.msra.mxu1 %v2473_v12  ;;  %v2547_v11 = vld [vmem:[%s3480_s3 + $0x130] ss:$28 sps:$4 sm:$0xff]   ;;  %v2550_v12 = vld [vmem:[%s3480_s3 + $0x164] ss:$28 sps:$4 sm:$0xff]  }
 0x108   :  { %1693 = vmatprep.subr.bf16.mxu0 %v2478_v13  ;;  %1775 = vmatprep.subr.bf16.mxu1 %v2481_v14  ;;  %v2551_v13 = vld [vmem:[%s3480_s3 + $0x328] ss:$28 sps:$4 sm:$0xff]   ;;  %v2548_v14 = vld [vmem:[%s3480_s3 + $0x160] ss:$28 sps:$4 sm:$0xff]  }
 0x10b   :  { %1694 = vmatpush1.bf16.msra.mxu0 %v2476_v15  ;;  %1776 = vmatpush1.bf16.msra.mxu1 %v2479_v16  ;;  %v2552_v15 = vld [vmem:[%s3480_s3 + $0x168] ss:$28 sps:$4 sm:$0xff]   ;;  %v2555_v16 = vld [vmem:[%s3480_s3 + $0x19c] ss:$28 sps:$4 sm:$0xff]  }
 0x10c   :  { %1695 = vmatprep.subr.bf16.mxu0 %v2484_v17  ;;  %1777 = vmatprep.subr.bf16.mxu1 %v2487_v22  ;;  %v2556_v17 = vld [vmem:[%s3480_s3 + $0x360] ss:$28 sps:$4 sm:$0xff]   ;;  %v2553_v22 = vld [vmem:[%s3480_s3 + $0x198] ss:$28 sps:$4 sm:$0xff]  }
 0x10f   :  { %1696 = vmatpush1.bf16.msra.mxu0 %v2482_v23  ;;  %1778 = vmatpush1.bf16.msra.mxu1 %v2485_v24  ;;  %v2557_v23 = vld [vmem:[%s3480_s3 + $0x1a0] ss:$28 sps:$4 sm:$0xff]   ;;  %v2560_v24 = vld [vmem:[%s3480_s3 + $0x1d4] ss:$28 sps:$4 sm:$0xff]  }
 0x110   :  { %1697 = vmatprep.subr.bf16.mxu0 %v2490_v25  ;;  %1779 = vmatprep.subr.bf16.mxu1 %v2493_v26  ;;  %v2561_v25 = vld [vmem:[%s3480_s3 + $0x558] ss:$28 sps:$4 sm:$0xff]   ;;  %v2558_v26 = vld [vmem:[%s3480_s3 + $0x1d0] ss:$28 sps:$4 sm:$0xff]  }
 0x113   :  { %1698 = vmatpush1.bf16.msra.mxu0 %v2488_v27  ;;  %1780 = vmatpush1.bf16.msra.mxu1 %v2491_v28  ;;  %v2562_v27 = vld [vmem:[%s3480_s3 + $0x398] ss:$28 sps:$4 sm:$0xff]   ;;  %v2565_v28 = vld [vmem:[%s3480_s3 + $0x20c] ss:$28 sps:$4 sm:$0xff]  }
 0x114   :  { %1699 = vmatprep.subr.bf16.mxu0 %v2496_v30  ;;  %1781 = vmatprep.subr.bf16.mxu1 %v2499_v31  ;;  %v2566_v30 = vld [vmem:[%s3480_s3 + $0x590] ss:$28 sps:$4 sm:$0xff]   ;;  %v2563_v31 = vld [vmem:[%s3480_s3 + $0x208] ss:$28 sps:$4 sm:$0xff]  }
 0x117   :  { %1700 = vmatpush1.bf16.msra.mxu0 %v2494_v34  ;;  %1782 = vmatpush1.bf16.msra.mxu1 %v2497_v35  ;;  %v2567_v34 = vld [vmem:[%s3480_s3 + $0x3d0] ss:$28 sps:$4 sm:$0xff]   ;;  %v2570_v35 = vld [vmem:[%s3480_s3 + $0x244] ss:$28 sps:$4 sm:$0xff]  }
 0x118   :  { %1701 = vmatprep.subr.bf16.mxu0 %v2502_v36  ;;  %1783 = vmatprep.subr.bf16.mxu1 %v2505_v38  ;;  %v2571_v36 = vld [vmem:[%s3480_s3 + $0x5c8] ss:$28 sps:$4 sm:$0xff]   ;;  %v2568_v38 = vld [vmem:[%s3480_s3 + $0x240] ss:$28 sps:$4 sm:$0xff]  }
 0x11b   :  { %1702 = vmatpush1.bf16.msra.mxu0 %v2500_v41  ;;  %1784 = vmatpush1.bf16.msra.mxu1 %v2503_v42  ;;  %v2575_v41 = vld [vmem:[%s3480_s3 + $0x27c] ss:$28 sps:$4 sm:$0xff]  }
 0x11c   :  { %1703 = vmatprep.subr.bf16.mxu0 %v2508_v43  ;;  %1785 = vmatprep.subr.bf16.mxu1 %v2511_v20  ;;  %v2576_v42 = vld [vmem:[%s3480_s3 + $0x600] ss:$28 sps:$4 sm:$0xff]   ;;  %v2573_v43 = vld [vmem:[%s3480_s3 + $0x278] ss:$28 sps:$4 sm:$0xff]  }
 0x11d   :  { %v2577_v20 = vld [vmem:[%s3480_s3 + $0x440] ss:$28 sps:$4 sm:$0xff]  }
 0x11f   :  { %1704 = vmatpush1.bf16.msra.mxu0 %v2506_v45  ;;  %1786 = vmatpush1.bf16.msra.mxu1 %v2509_v46  ;;  %v2581_v45 = vld [vmem:[%s3480_s3 + $0x638] ss:$28 sps:$4 sm:$0xff]   ;;  %v2578_v46 = vld [vmem:[%s3480_s3 + $0x2b0] ss:$28 sps:$4 sm:$0xff]  }
 0x120   :  { %1705 = vmatprep.subr.bf16.mxu0 %v2514_v47  ;;  %1787 = vmatprep.subr.bf16.mxu1 %v2517_v40  ;;  %v2582_v47 = vld [vmem:[%s3480_s3 + $0x478] ss:$28 sps:$4 sm:$0xff]   ;;  %v2585_v40 = vld [vmem:[%s3480_s3 + $0x2ec] ss:$28 sps:$4 sm:$0xff]  }
 0x123   :  { %1706 = vmatpush1.bf16.msra.mxu0 %v2512_v49  ;;  %1788 = vmatpush1.bf16.msra.mxu1 %v2515_v50  ;;  %v2583_v49 = vld [vmem:[%s3480_s3 + $0x2e8] ss:$28 sps:$4 sm:$0xff]   ;;  %v2587_v50 = vld [vmem:[%s3480_s3 + $0x4b0] ss:$28 sps:$4 sm:$0xff]  }
 0x124   :  { %1798 = vmatprep.subr.bf16.mxu0 %v2520_v51  ;;  %2252 = vmatprep.subr.bf16.mxu1 %v2521_v53  ;;  %v2590_v51 = vld [vmem:[%s3480_s3 + $0x324] ss:$28 sps:$4 sm:$0xff]  }
 0x125   :  { %v2591_v53 = vld [vmem:[%s3480_s3 + $0x6a8] ss:$28 sps:$4 sm:$0xff]  }
 0x126   :  { %1708 = vmatmul.mubr.bf16.vlgmr.msra.gmra.mrb[0].mxu0 %v3157_v54  ;;  %1790 = vmatmul.mubr.bf16.vlgmr.msra.gmra.mrb[8].mxu1 %v3157_v54 }
 0x127   :  { %1799 = vmatpush1.bf16.msra.mxu0 %v2518_v55  ;;  %1830 = vmatprep.mubr.bf16.mxu0 %v2943_v33  ;;  %v2588_v55 = vld [vmem:[%s3480_s3 + $0x320] ss:$28 sps:$4 sm:$0xff]  }
 0x128   :  { %2253 = vmatpush3.bf16.msra.mxu1 %v2522_v56  ;;  %1912 = vmatprep.mubr.bf16.mxu1 %v2943_v33  ;;  %v2532_v33 = vld [vmem:[%s3480_s3 + $0x88] ss:$28 sps:$4 sm:$0xff]  }
 0x129   :  { %1800 = vmatprep.subr.bf16.mxu0 %v2525_v57  ;;  %2254 = vmatprep.subr.bf16.mxu1 %v2526_v58  ;;  %v2592_v56 = vld [vmem:[%s3480_s3 + $0x4e8] ss:$28 sps:$4 sm:$0xff]   ;;  %v2595_v57 = vld [vmem:[%s3480_s3 + $0x35c] ss:$28 sps:$4 sm:$0xff]  }
 0x12a   :  { %v2596_v58 = vld [vmem:[%s3480_s3 + $0x6e0] ss:$28 sps:$4 sm:$0xff]  }
 0x12b   :  { %1801 = vmatpush1.bf16.msra.mxu0 %v2523_v59  ;;  %v2593_v59 = vld [vmem:[%s3480_s3 + $0x358] ss:$28 sps:$4 sm:$0xff]  }
 0x12c   :  { %2255 = vmatpush3.bf16.msra.mxu1 %v2527_v60  ;;  %1802 = vmatprep.subr.bf16.mxu0 %v2530_v61  ;;  %v2597_v60 = vld [vmem:[%s3480_s3 + $0x520] ss:$28 sps:$4 sm:$0xff]   ;;  %v2600_v61 = vld [vmem:[%s3480_s3 + $0x394] ss:$28 sps:$4 sm:$0xff]  }
 0x12d   :  { %2256 = vmatprep.subr.bf16.mxu1 %v2531_v62  ;;  %v2598_v62 = vld [vmem:[%s3480_s3 + $0x390] ss:$28 sps:$4 sm:$0xff]  }
 0x12f   :  { %1803 = vmatpush1.bf16.msra.mxu0 %v2528_v63  ;;  %v2603_v63 = vld [vmem:[%s3480_s3 + $0x3cc] ss:$28 sps:$4 sm:$0xff]  }
 0x130   :  { %2257 = vmatpush3.bf16.msra.mxu1 %v2532_v33  ;;  %1804 = vmatprep.subr.bf16.mxu0 %v2535_v0  ;;  %v2601_v33 = vld [vmem:[%s3480_s3 + $0x3c8] ss:$28 sps:$4 sm:$0xff]  }
 0x131   :  { %2258 = vmatprep.subr.bf16.mxu1 %v2536_v1  ;;  %v2606_v0 = vld [vmem:[%s3480_s3 + $0x404] ss:$28 sps:$4 sm:$0xff]  }
 0x132   :  { %v2604_v1 = vld [vmem:[%s3480_s3 + $0x400] ss:$28 sps:$4 sm:$0xff]  }
 0x133   :  { %1805 = vmatpush1.bf16.msra.mxu0 %v2533_v2  ;;  %v2612_v2 = vld [vmem:[%s3480_s3 + $0x474] ss:$28 sps:$4 sm:$0xff]  }
 0x134   :  { %2259 = vmatpush3.bf16.msra.mxu1 %v2537_v3  ;;  %1806 = vmatprep.subr.bf16.mxu0 %v2540_v4  ;;  %v2610_v3 = vld [vmem:[%s3480_s3 + $0x470] ss:$28 sps:$4 sm:$0xff]  }
 0x135   :  { %2260 = vmatprep.subr.bf16.mxu1 %v2541_v5  ;;  %v2615_v4 = vld [vmem:[%s3480_s3 + $0x4ac] ss:$28 sps:$4 sm:$0xff]  }
 0x136   :  { %v2613_v5 = vld [vmem:[%s3480_s3 + $0x4a8] ss:$28 sps:$4 sm:$0xff]  }
 0x137   :  { %1807 = vmatpush1.bf16.msra.mxu0 %v2538_v6  ;;  %v2618_v6 = vld [vmem:[%s3480_s3 + $0x4e4] ss:$28 sps:$4 sm:$0xff]  }
 0x138   :  { %2261 = vmatpush3.bf16.msra.mxu1 %v2542_v7  ;;  %1808 = vmatprep.subr.bf16.mxu0 %v2545_v8  ;;  %v2616_v7 = vld [vmem:[%s3480_s3 + $0x4e0] ss:$28 sps:$4 sm:$0xff]  }
 0x139   :  { %2262 = vmatprep.subr.bf16.mxu1 %v2546_v9  ;;  %v2621_v8 = vld [vmem:[%s3480_s3 + $0x51c] ss:$28 sps:$4 sm:$0xff]  }
 0x13a   :  { %v2619_v9 = vld [vmem:[%s3480_s3 + $0x518] ss:$28 sps:$4 sm:$0xff]  }
 0x13b   :  { %1809 = vmatpush1.bf16.msra.mxu0 %v2543_v10  ;;  %v2624_v10 = vld [vmem:[%s3480_s3 + $0x554] ss:$28 sps:$4 sm:$0xff]  }
 0x13c   :  { %2263 = vmatpush3.bf16.msra.mxu1 %v2547_v11  ;;  %1810 = vmatprep.subr.bf16.mxu0 %v2550_v12  ;;  %v2622_v11 = vld [vmem:[%s3480_s3 + $0x550] ss:$28 sps:$4 sm:$0xff]  }
 0x13d   :  { %2264 = vmatprep.subr.bf16.mxu1 %v2551_v13  ;;  %v2627_v12 = vld [vmem:[%s3480_s3 + $0x58c] ss:$28 sps:$4 sm:$0xff]  }
 0x13e   :  { %v2625_v13 = vld [vmem:[%s3480_s3 + $0x588] ss:$28 sps:$4 sm:$0xff]  }
 0x13f   :  { %1811 = vmatpush1.bf16.msra.mxu0 %v2548_v14  ;;  %v2630_v14 = vld [vmem:[%s3480_s3 + $0x5c4] ss:$28 sps:$4 sm:$0xff]  }
 0x140   :  { %2265 = vmatpush3.bf16.msra.mxu1 %v2552_v15  ;;  %1812 = vmatprep.subr.bf16.mxu0 %v2555_v16  ;;  %v2628_v15 = vld [vmem:[%s3480_s3 + $0x5c0] ss:$28 sps:$4 sm:$0xff]  }
 0x141   :  { %2266 = vmatprep.subr.bf16.mxu1 %v2556_v17  ;;  %v2633_v16 = vld [vmem:[%s3480_s3 + $0x5fc] ss:$28 sps:$4 sm:$0xff]  }
 0x142   :  { %v2631_v17 = vld [vmem:[%s3480_s3 + $0x5f8] ss:$28 sps:$4 sm:$0xff]  }
 0x143   :  { %1813 = vmatpush1.bf16.msra.mxu0 %v2553_v22  ;;  %v2636_v22 = vld [vmem:[%s3480_s3 + $0x634] ss:$28 sps:$4 sm:$0xff]  }
 0x144   :  { %2267 = vmatpush3.bf16.msra.mxu1 %v2557_v23  ;;  %1814 = vmatprep.subr.bf16.mxu0 %v2560_v24  ;;  %v2634_v23 = vld [vmem:[%s3480_s3 + $0x630] ss:$28 sps:$4 sm:$0xff]  }
 0x145   :  { %2274 = vmatprep.subr.bf16.mxu1 %v2561_v25  ;;  %v2639_v24 = vld [vmem:[%s3480_s3 + $0x66c] ss:$28 sps:$4 sm:$0xff]  }
 0x146   :  { %v2637_v25 = vld [vmem:[%s3480_s3 + $0x668] ss:$28 sps:$4 sm:$0xff]  }
 0x147   :  { %1913 = vmatmul.mubr.bf16.vlgmr.msra.gmra.mrb[12].mxu1 %v2954_v37  ;;  %1815 = vmatpush1.bf16.msra.mxu0 %v2558_v26  ;;  %v2642_v26 = vld [vmem:[%s3480_s3 + $0x6a4] ss:$28 sps:$4 sm:$0xff]  }
 0x148   :  { %2275 = vmatpush3.bf16.msra.mxu1 %v2562_v27  ;;  %1952 = vmatprep.mubr.bf16.mxu1 %v2986_v52  ;;  %v2640_v27 = vld [vmem:[%s3480_s3 + $0x6a0] ss:$28 sps:$4 sm:$0xff]  }
 0x149   :  { %1816 = vmatprep.subr.bf16.mxu0 %v2565_v28  ;;  %2276 = vmatprep.subr.bf16.mxu1 %v2566_v30  ;;  %v2645_v28 = vld [vmem:[%s3480_s3 + $0x6dc] ss:$28 sps:$4 sm:$0xff]  }
 0x14a   :  { %v2643_v30 = vld [vmem:[%s3480_s3 + $0x6d8] ss:$28 sps:$4 sm:$0xff]  }
 0x14b   :  { %1817 = vmatpush1.bf16.msra.mxu0 %v2563_v31  ;;  %v445_v31 = vld [vmem:[%s3481_s4] sm:$0x7f] }
 0x14c   :  { %2277 = vmatpush3.bf16.msra.mxu1 %v2567_v34  ;;  %1818 = vmatprep.subr.bf16.mxu0 %v2570_v35  ;;  %v450_v34 = vrot.slane %v445_v31, %v34_v19  ;;  %v458_v35 = vrot.slane %v445_v31, %v42_v32 }
 0x14d   :  { %2278 = vmatprep.subr.bf16.mxu1 %v2571_v36  ;;  %v454_v36 = vrot.slane %v445_v31, %v38_v21 }
 0x14f   :  { %1819 = vmatpush1.bf16.msra.mxu0 %v2568_v38  ;;  %v462_v38 = vrot.slane %v445_v31, %v46_v29 }
 0x150   :  { %2279 = vmatpush3.bf16.msra.mxu1 %v2572_v39  ;;  %1820 = vmatprep.subr.bf16.mxu0 %v2575_v41 }
 0x151   :  { %2280 = vmatprep.subr.bf16.mxu1 %v2576_v42 }
 0x153   :  { %1821 = vmatpush1.bf16.msra.mxu0 %v2573_v43 }
 0x154   :  { %2281 = vmatpush3.bf16.msra.mxu1 %v2577_v20  ;;  %1822 = vmatprep.subr.bf16.mxu0 %v2580_v44 }
 0x155   :  { %2282 = vmatprep.subr.bf16.mxu1 %v2581_v45 }
 0x157   :  { %1823 = vmatpush1.bf16.msra.mxu0 %v2578_v46 }
 0x158   :  { %2283 = vmatpush3.bf16.msra.mxu1 %v2582_v47  ;;  %1824 = vmatprep.subr.bf16.mxu0 %v2585_v40 }
 0x159   :  { %2284 = vmatprep.subr.bf16.mxu1 %v2586_v48 }
 0x15b   :  { %1825 = vmatpush1.bf16.msra.mxu0 %v2583_v49 }
 0x15c   :  { %2285 = vmatpush3.bf16.msra.mxu1 %v2587_v50  ;;  %1826 = vmatprep.subr.bf16.mxu0 %v2590_v51 }
 0x15d   :  { %2286 = vmatprep.subr.bf16.mxu1 %v2591_v53  ;;  %v473_v53 = vsub.s32 6, %v2927_v18 }
 0x15f   :  { %1827 = vmatpush1.bf16.msra.mxu0 %v2588_v55  ;;  %v474_v55 = vrot.slane %v445_v31, %v473_v53 }
 0x160   :  { %2287 = vmatpush3.bf16.msra.mxu1 %v2592_v56  ;;  %1828 = vmatprep.subr.bf16.mxu0 %v2595_v57 }
 0x161   :  { %2288 = vmatprep.subr.bf16.mxu1 %v2596_v58 }
 0x163   :  { %1829 = vmatpush1.bf16.msra.mxu0 %v2593_v59 }
 0x164   :  { %2289 = vmatpush3.bf16.msra.mxu1 %v2597_v60  ;;  %1839 = vmatprep.subr.bf16.mxu0 %v2600_v61 }
 0x166   :  { %1831 = vmatmul.mubr.bf16.vlgmr.msra.gmra.mrb[4].mxu0 %v2954_v37  ;;  %v2609_v37 = vld [vmem:[%s3480_s3 + $0x43c] ss:$28 sps:$4 sm:$0xff]  }
 0x167   :  { %1953 = vmatmul.mubr.bf16.vlgmr.msra.gmra.mrb[16].mxu1 %v3157_v54  ;;  %1840 = vmatpush1.bf16.msra.mxu0 %v2598_v62 }
 0x168   :  { %1871 = vmatprep.mubr.bf16.mxu0 %v2986_v52  ;;  %1841 = vmatprep.subr.bf16.mxu0 %v2603_v63  ;;  %v2607_v52 = vld [vmem:[%s3480_s3 + $0x438] ss:$28 sps:$4 sm:$0xff]   ;;  %s2671_s3 = smov [#allocation2]  }
 0x169   :  { %s2000_s4 = sshll.u32 %s2671_s3, 4  ;;  %s2001_s4 = int_to_ptr.vmem [resolvable:$true] %s2000_s4 }
 0x16a   :  { %s2646_s1 = scalar_lea.vmem %s2001_s4, 448  ;;  %p2651_p1 = scmp.lt.s32.totalorder %s2001_s4, %s2001_s4 }
 0x16b   :  { %1842 = vmatpush1.bf16.msra.mxu0 %v2601_v33  ;;  %v465_v33 = vsub.s32 4, %v2927_v18  ;;  %p2647_p0 = scmp.ne.s32.totalorder %s2001_s4, %s2646_s1  ;;  %p2652_p2 = scmp.lt.s32.totalorder %s2646_s1, %s2646_s1 }
 0x16c   :  { %1843 = vmatprep.subr.bf16.mxu0 %v2606_v0  ;;  %v469_v0 = vsub.s32 5, %v2927_v18 }
 0x16d   :  { %p2653_p3 = por %p2652_p2, %p2651_p1 }
 0x16f   :  { %1844 = vmatpush1.bf16.msra.mxu0 %v2604_v1  ;;  %v466_v1 = vrot.slane %v445_v31, %v465_v33  ;;  %p2654_p4 = pnand %p2653_p3, %p2647_p0 }
 0x170   :  { %1845 = vmatprep.subr.bf16.mxu0 %v2609_v37  ;;  %v470_v37 = vrot.slane %v445_v31, %v469_v0 }
 0x173   :  { %1846 = vmatpush1.bf16.msra.mxu0 %v2607_v52 }
 0x174   :  { %1847 = vmatprep.subr.bf16.mxu0 %v2612_v2 }
 0x177   :  { %1848 = vmatpush1.bf16.msra.mxu0 %v2610_v3 }
 0x178   :  { %1849 = vmatprep.subr.bf16.mxu0 %v2615_v4 }
 0x17b   :  { %1850 = vmatpush1.bf16.msra.mxu0 %v2613_v5 }
 0x17c   :  { %1851 = vmatprep.subr.bf16.mxu0 %v2618_v6 }
 0x17f   :  { %1852 = vmatpush1.bf16.msra.mxu0 %v2616_v7 }
 0x180   :  { %1853 = vmatprep.subr.bf16.mxu0 %v2621_v8 }
 0x183   :  { %1854 = vmatpush1.bf16.msra.mxu0 %v2619_v9 }
 0x184   :  { %1855 = vmatprep.subr.bf16.mxu0 %v2624_v10 }
 0x187   :  { %1856 = vmatpush1.bf16.msra.mxu0 %v2622_v11 }
 0x188   :  { %1857 = vmatprep.subr.bf16.mxu0 %v2627_v12 }
 0x18b   :  { %1858 = vmatpush1.bf16.msra.mxu0 %v2625_v13 }
 0x18c   :  { %1859 = vmatprep.subr.bf16.mxu0 %v2630_v14 }
 0x18f   :  { %1860 = vmatpush1.bf16.msra.mxu0 %v2628_v15 }
 0x190   :  { %1861 = vmatprep.subr.bf16.mxu0 %v2633_v16 }
 0x193   :  { %1862 = vmatpush1.bf16.msra.mxu0 %v2631_v17 }
 0x194   :  { %1863 = vmatprep.subr.bf16.mxu0 %v2636_v22 }
 0x197   :  { %1864 = vmatpush1.bf16.msra.mxu0 %v2634_v23 }
 0x198   :  { %1865 = vmatprep.subr.bf16.mxu0 %v2639_v24 }
 0x19b   :  { %1866 = vmatpush1.bf16.msra.mxu0 %v2637_v25 }
 0x19c   :  { %1867 = vmatprep.subr.bf16.mxu0 %v2642_v26 }
 0x19f   :  { %1868 = vmatpush1.bf16.msra.mxu0 %v2640_v27 }
 0x1a0   :  { %1869 = vmatprep.subr.bf16.mxu0 %v2645_v28 }
 0x1a3   :  { %1870 = vmatpush1.bf16.msra.mxu0 %v2643_v30 }
 0x1a6   :  { %1872 = vmatmul.mubr.bf16.vlgmr.msra.gmra.mrb[4].mxu0 %v3157_v54 }
 0x1f9   :  { %v1709_v39 = vpop.f32.mrb[0].mxu0  ;;  %v1791_v41 = vpop.f32.mrb[8].mxu1 }
 0x1fa   :  { %v2296_v42 = vadd.f32 %v1709_v39, %v450_v34  ;;  %v2298_v54 = vadd.f32 %v1791_v41, %v458_v35  ;;  %v1711_v43 = vpop.f32.mrb[1].mxu0  ;;  %v1793_v20 = vpop.f32.mrb[9].mxu1 }
 0x1fb   :  { %v2297_v44 = vadd.f32 %v1711_v43, %v454_v36  ;;  %v2299_v45 = vadd.f32 %v1793_v20, %v462_v38  ;;  %v1713_v46 = vpop.f32.mrb[2].mxu0  ;;  %v1795_v47 = vpop.f32.mrb[10].mxu1 }
 0x1fc   :  { %v1714_v19 = vpop.f32.mrb[3].mxu0  ;;  %v1796_v40 = vpop.f32.mrb[11].mxu1 }
 0x1fd   :  { %v2248_v48 = vpack.c.bf16 %v2297_v44, %v2296_v42  ;;  %v2249_v32 = vpack.c.bf16 %v2299_v45, %v2298_v54 }
 0x1ff   :  { %1989 = vst [vmem:[#allocation2] sm:$0xff] %v2248_v48  ;;  %1990 = vst [vmem:[#allocation2 + $0x8] sm:$0xff] %v2249_v32 }
 0x21a   :  { %v2268_v21 = vpop.f32.mrb[12].mxu1 }
 0x21b   :  { %v2269_v49 = vpop.f32.mrb[13].mxu1 }
 0x21c   :  { %v2270_v50 = vadd.f32 %v2269_v49, %v2268_v21  ;;  %v2271_v29 = vpop.f32.mrb[14].mxu1 }
 0x21d   :  { %v2272_v51 = vpop.f32.mrb[15].mxu1 }
 0x21e   :  { %v1915_v58 = vadd.f32 %v2270_v50, %v474_v55 }
 0x23a   :  { %v2290_v56 = vpop.f32.mrb[16].mxu1 }
 0x23b   :  { %v2291_v57 = vpop.f32.mrb[17].mxu1 }
 0x23c   :  { %v2292_v59 = vadd.f32 %v2291_v57, %v2290_v56  ;;  %v2293_v60 = vpop.f32.mrb[18].mxu1 }
 0x23d   :  { %v2294_v61 = vpop.f32.mrb[19].mxu1 }
 0x23e   :  { %v1955_v62 = vadd.f32 %v2292_v59, %v1915_v58 }
 0x240   :  { %v2251_v63 = vpack.c.bf16 %v1955_v62, %v1955_v62 }
 0x242   :  { %1993 = vst.msk [vmem:[#allocation2 + $0x18] sm:$0xf] %vm1992_vm2, %v2251_v63 }
 0x279   :  { %v1873_v52 = vpop.f32.mrb[4].mxu0 }
 0x27a   :  { %v2300_v2 = vadd.f32 %v1873_v52, %v466_v1  ;;  %v1875_v3 = vpop.f32.mrb[5].mxu0 }
 0x27b   :  { %v2301_v4 = vadd.f32 %v1875_v3, %v470_v37  ;;  %v1877_v5 = vpop.f32.mrb[6].mxu0 }
 0x27c   :  { %v1878_v6 = vpop.f32.mrb[7].mxu0 }
 0x27d   :  { %v2250_v7 = vpack.c.bf16 %v2301_v4, %v2300_v2 }
 0x27f   :  { %1991 = vst [vmem:[#allocation2 + $0x10] sm:$0xff] %v2250_v7 }
 0x280   :  { %2657 = shalt.err (!%p2654_p4)
}
 0x281   :  { %s2658_s16 = scalar_lea.hbm %s3482_s5, 448 }
 0x282   :  { %p2659_p5 = scmp.ne.s32.totalorder %s3482_s5, %s2658_s16  ;;  %p2662_p6 = scmp.lt.u32.totalorder %s2658_s16, %s3482_s5 }
 0x284   :  { %p2664_p7 = pnand %p2662_p6, %p2659_p5 }
 0x286   :  { %2667 = shalt.err (!%p2664_p7)
}
 0x287   :  { %2003 = dma.vmem_to_hbm [thread:$0]  %s2001_s4, 448, %s3482_s5, [#allocation3]  }
 0x288   :  { %2668 = dma.done.wait [#allocation3], 448  }
 0x289   :  { %2669 = vsyncadd [#allocation3], 4294966848 }
 0x28a   :  { %2007 = vsyncpa [#allocation3], 1 }

// kernel: tpu_custom_call.1
= control target key start
LH: loop header
LB: loop body
LE: loop exit
PB: predicated region body
PF: predicated region fallthrough
CT: control target
= control target key end

     0   :  { %vm86_vm0 = vcmask 1041408   ;;  %v2670_v3 = vmov 0   ;;  %vm82_vm1 = vcmask 162816   ;;  %s3477_s0 = inlined_call_operand.vmem [shape: f32[8,20], index: 0, kind: input, shape index: {}]   ;;  %s3478_s1 = inlined_call_operand.vmem [shape: bf16[20,512], index: 1, kind: input, shape index: {}]   ;;  %s3479_s2 = inlined_call_operand.vmem [shape: f32[1,512], index: 2, kind: input, shape index: {}]   ;;  %s3480_s3 = inlined_call_operand.vmem [shape: bf16[512,784], index: 3, kind: input, shape index: {}]   ;;  %s3481_s4 = inlined_call_operand.vmem [shape: f32[1,784], index: 4, kind: input, shape index: {}]   ;;  %s3482_s5 = inlined_call_operand.hbm [shape: bf16[8,784], index: 5, kind: output, shape index: {}]  }
   0x1   :  { %v2316_v0 = vld [vmem:[%s3478_s1 + $0x4] ss:$16 sps:$4 sm:$0xff]   ;;  %v2318_v1 = vld [vmem:[%s3478_s1] ss:$16 sps:$4 sm:$0xff]   ;;  %131 = vmatprep.mubr.bf16.mxu1 %v2670_v3  ;;  %v2323_v7 = vld [vmem:[%s3478_s1 + $0xc] ss:$16 sps:$4 sm:$0xff]  }
   0x2   :  { %v28_v2 = vld [vmem:[%s3478_s1 + $0x20] sm:$0x33]  ;;  %99 = vmatprep.subr.bf16.mxu1 %v2316_v0  ;;  %v2321_v10 = vld [vmem:[%s3478_s1 + $0x8] ss:$16 sps:$4 sm:$0xff]   ;;  %v2338_v18 = vld [vmem:[%s3480_s3 + $0x74] ss:$28 sps:$4 sm:$0xff]  }
   0x3   :  { %v2013_v4 = vcombine.high %v28_v2, %v28_v2  ;;  %v2012_v5 = vcombine.low %v28_v2, %v28_v2  ;;  %100 = vmatpush1.bf16.msra.mxu1 %v2318_v1  ;;  %v22_v6 = vld [vmem:[%s3477_s0] sm:$0xff]  ;;  %v29_v11 = vld [vmem:[%s3478_s1 + $0x28] sm:$0x33]  ;;  %v2332_v14 = vld [vmem:[%s3480_s3 + $0x3c] ss:$28 sps:$4 sm:$0xff]  }
   0x4   :  { %v2326_v9 = vld [vmem:[%s3480_s3 + $0x4] ss:$28 sps:$4 sm:$0xff]   ;;  %v23_v12 = vpack.c.bf16 %v22_v6, %v22_v6  ;;  %v2015_v15 = vcombine.high %v29_v11, %v29_v11  ;;  %v2014_v16 = vcombine.low %v29_v11, %v29_v11  ;;  %v2337_v17 = vld [vmem:[%s3480_s3 + $0x38] ss:$28 sps:$4 sm:$0xff]   ;;  %v2330_v19 = vld [vmem:[%s3480_s3 + $0xc] ss:$28 sps:$4 sm:$0xff]  }
   0x5   :  { %2016 = vmatprep.subr.msk.bf16.mxu1 %vm86_vm0, %v2013_v4  ;;  %v88_v8 = vsel %vm86_vm0, %v2012_v5, 0  ;;  %1634 = vmatprep.subr.bf16.mxu0 %v2326_v9  ;;  %v2331_v13 = vld [vmem:[%s3480_s3] ss:$28 sps:$4 sm:$0xff]   ;;  %v2343_v21 = vld [vmem:[%s3480_s3 + $0x70] ss:$28 sps:$4 sm:$0xff]  }
   0x6   :  { %1635 = vmatpush1.bf16.msra.mxu0 %v2331_v13  ;;  %v94_v20 = vsel %vm86_vm0, %v2014_v16, 0  ;;  %v2344_v22 = vld [vmem:[%s3480_s3 + $0xac] ss:$28 sps:$4 sm:$0xff]   ;;  %v2336_v24 = vld [vmem:[%s3480_s3 + $0x44] ss:$28 sps:$4 sm:$0xff]  }
   0x7   :  { %102 = vmatpush1.bf16.msra.mxu1 %v88_v8  ;;  %1636 = vmatprep.subr.bf16.mxu0 %v2332_v14  ;;  %v2328_v23 = vld [vmem:[%s3480_s3 + $0x8] ss:$28 sps:$4 sm:$0xff]   ;;  %v2334_v27 = vld [vmem:[%s3480_s3 + $0x40] ss:$28 sps:$4 sm:$0xff]   ;;  %v2340_v31 = vld [vmem:[%s3480_s3 + $0x78] ss:$28 sps:$4 sm:$0xff]  }
   0x8   :  { %140 = vmatprep.subr.bf16.mxu1 %v2323_v7  ;;  %v2349_v25 = vld [vmem:[%s3480_s3 + $0xa8] ss:$28 sps:$4 sm:$0xff]   ;;  %v2342_v28 = vld [vmem:[%s3480_s3 + $0x7c] ss:$28 sps:$4 sm:$0xff]   ;;  %v2348_v32 = vld [vmem:[%s3480_s3 + $0xb4] ss:$28 sps:$4 sm:$0xff]  }
   0x9   :  { %v2350_v26 = vld [vmem:[%s3480_s3 + $0xe4] ss:$28 sps:$4 sm:$0xff]   ;;  %v2356_v30 = vld [vmem:[%s3480_s3 + $0x11c] ss:$28 sps:$4 sm:$0xff]   ;;  %v2362_v34 = vld [vmem:[%s3480_s3 + $0x154] ss:$28 sps:$4 sm:$0xff]  }
   0xa   :  { %2017 = vmatmul.mubr.msk.bf16.vlgmr.msra.gmra.mrb[0].mxu1 %vm82_vm1, %v23_v12  ;;  %1637 = vmatpush1.bf16.msra.mxu0 %v2337_v17  ;;  %v2355_v29 = vld [vmem:[%s3480_s3 + $0xe0] ss:$28 sps:$4 sm:$0xff]   ;;  %v2361_v33 = vld [vmem:[%s3480_s3 + $0x118] ss:$28 sps:$4 sm:$0xff]   ;;  %v2346_v35 = vld [vmem:[%s3480_s3 + $0xb0] ss:$28 sps:$4 sm:$0xff]  }
   0xb   :  { %141 = vmatpush1.bf16.msra.mxu1 %v2321_v10  ;;  %172 = vmatprep.mubr.bf16.mxu1 %v2670_v3  ;;  %v2354_v36 = vld [vmem:[%s3480_s3 + $0xec] ss:$28 sps:$4 sm:$0xff]   ;;  %v2360_v40 = vld [vmem:[%s3480_s3 + $0x124] ss:$28 sps:$4 sm:$0xff]   ;;  %v2366_v44 = vld [vmem:[%s3480_s3 + $0x15c] ss:$28 sps:$4 sm:$0xff]  }
   0xc   :  { %2018 = vmatprep.subr.msk.bf16.mxu1 %vm86_vm0, %v2015_v15  ;;  %1638 = vmatprep.subr.bf16.mxu0 %v2338_v18  ;;  %v2367_v37 = vld [vmem:[%s3480_s3 + $0x150] ss:$28 sps:$4 sm:$0xff]   ;;  %v2352_v39 = vld [vmem:[%s3480_s3 + $0xe8] ss:$28 sps:$4 sm:$0xff]   ;;  %v2358_v43 = vld [vmem:[%s3480_s3 + $0x120] ss:$28 sps:$4 sm:$0xff]  }
   0xd   :  { %v2368_v38 = vld [vmem:[%s3480_s3 + $0x18c] ss:$28 sps:$4 sm:$0xff]   ;;  %v2374_v42 = vld [vmem:[%s3480_s3 + $0x1c4] ss:$28 sps:$4 sm:$0xff]   ;;  %v2380_v46 = vld [vmem:[%s3480_s3 + $0x1fc] ss:$28 sps:$4 sm:$0xff]  }
   0xe   :  { %1639 = vmatpush1.bf16.msra.mxu0 %v2343_v21  ;;  %v2373_v41 = vld [vmem:[%s3480_s3 + $0x188] ss:$28 sps:$4 sm:$0xff]   ;;  %v2379_v45 = vld [vmem:[%s3480_s3 + $0x1c0] ss:$28 sps:$4 sm:$0xff]   ;;  %v2364_v47 = vld [vmem:[%s3480_s3 + $0x158] ss:$28 sps:$4 sm:$0xff]  }
   0xf   :  { %143 = vmatpush1.bf16.msra.mxu1 %v94_v20  ;;  %1640 = vmatprep.subr.bf16.mxu0 %v2344_v22  ;;  %v2372_v48 = vld [vmem:[%s3480_s3 + $0x194] ss:$28 sps:$4 sm:$0xff]   ;;  %v2378_v52 = vld [vmem:[%s3480_s3 + $0x1cc] ss:$28 sps:$4 sm:$0xff]   ;;  %v2384_v56 = vld [vmem:[%s3480_s3 + $0x204] ss:$28 sps:$4 sm:$0xff]  }
  0x10   :  { %1716 = vmatprep.subr.bf16.mxu1 %v2330_v19  ;;  %v2385_v49 = vld [vmem:[%s3480_s3 + $0x1f8] ss:$28 sps:$4 sm:$0xff]   ;;  %v2370_v50 = vld [vmem:[%s3480_s3 + $0x190] ss:$28 sps:$4 sm:$0xff]   ;;  %v2376_v55 = vld [vmem:[%s3480_s3 + $0x1c8] ss:$28 sps:$4 sm:$0xff]  }
  0x11   :  { %v2386_v51 = vld [vmem:[%s3480_s3 + $0x234] ss:$28 sps:$4 sm:$0xff]   ;;  %v2392_v54 = vld [vmem:[%s3480_s3 + $0x26c] ss:$28 sps:$4 sm:$0xff]   ;;  %v2398_v58 = vld [vmem:[%s3480_s3 + $0x2a4] ss:$28 sps:$4 sm:$0xff]  }
  0x12   :  { %2019 = vmatmul.mubr.msk.bf16.vlgmr.msra.gmra.mrb[4].mxu1 %vm82_vm1, %v23_v12  ;;  %1641 = vmatpush1.bf16.msra.mxu0 %v2349_v25  ;;  %v2391_v53 = vld [vmem:[%s3480_s3 + $0x230] ss:$28 sps:$4 sm:$0xff]   ;;  %v2397_v57 = vld [vmem:[%s3480_s3 + $0x268] ss:$28 sps:$4 sm:$0xff]   ;;  %v2382_v59 = vld [vmem:[%s3480_s3 + $0x200] ss:$28 sps:$4 sm:$0xff]  }
  0x13   :  { %1717 = vmatpush1.bf16.msra.mxu1 %v2328_v23  ;;  %1642 = vmatprep.subr.bf16.mxu0 %v2350_v26  ;;  %v2390_v60 = vld [vmem:[%s3480_s3 + $0x23c] ss:$28 sps:$4 sm:$0xff]   ;;  %v2396_v0 = vld [vmem:[%s3480_s3 + $0x274] ss:$28 sps:$4 sm:$0xff]   ;;  %v2402_v3 = vld [vmem:[%s3480_s3 + $0x2ac] ss:$28 sps:$4 sm:$0xff]  }
  0x14   :  { %1718 = vmatprep.subr.bf16.mxu1 %v2336_v24  ;;  %v2403_v61 = vld [vmem:[%s3480_s3 + $0x2a0] ss:$28 sps:$4 sm:$0xff]   ;;  %v2388_v63 = vld [vmem:[%s3480_s3 + $0x238] ss:$28 sps:$4 sm:$0xff]   ;;  %v2394_v2 = vld [vmem:[%s3480_s3 + $0x270] ss:$28 sps:$4 sm:$0xff]  }
  0x15   :  { %v2404_v62 = vld [vmem:[%s3480_s3 + $0x2dc] ss:$28 sps:$4 sm:$0xff]   ;;  %v2400_v4 = vld [vmem:[%s3480_s3 + $0x2a8] ss:$28 sps:$4 sm:$0xff]   ;;  %v2410_v7 = vld [vmem:[%s3480_s3 + $0x314] ss:$28 sps:$4 sm:$0xff]  }
  0x16   :  { %1643 = vmatpush1.bf16.msra.mxu0 %v2355_v29  ;;  %v2409_v1 = vld [vmem:[%s3480_s3 + $0x2d8] ss:$28 sps:$4 sm:$0xff]   ;;  %v2408_v5 = vld [vmem:[%s3480_s3 + $0x2e4] ss:$28 sps:$4 sm:$0xff]   ;;  %v2415_v10 = vld [vmem:[%s3480_s3 + $0x310] ss:$28 sps:$4 sm:$0xff]  }
  0x17   :  { %1719 = vmatpush1.bf16.msra.mxu1 %v2334_v27  ;;  %1644 = vmatprep.subr.bf16.mxu0 %v2356_v30  ;;  %v2406_v6 = vld [vmem:[%s3480_s3 + $0x2e0] ss:$28 sps:$4 sm:$0xff]   ;;  %v2412_v9 = vld [vmem:[%s3480_s3 + $0x318] ss:$28 sps:$4 sm:$0xff]   ;;  %v2416_v11 = vld [vmem:[%s3480_s3 + $0x34c] ss:$28 sps:$4 sm:$0xff]  }
  0x18   :  { %1720 = vmatprep.subr.bf16.mxu1 %v2342_v28  ;;  %v2414_v8 = vld [vmem:[%s3480_s3 + $0x31c] ss:$28 sps:$4 sm:$0xff]   ;;  %v2420_v12 = vld [vmem:[%s3480_s3 + $0x354] ss:$28 sps:$4 sm:$0xff]   ;;  %v2421_v14 = vld [vmem:[%s3480_s3 + $0x348] ss:$28 sps:$4 sm:$0xff]  }
  0x19   :  { %v2418_v13 = vld [vmem:[%s3480_s3 + $0x350] ss:$28 sps:$4 sm:$0xff]   ;;  %v2424_v15 = vld [vmem:[%s3480_s3 + $0x384] ss:$28 sps:$4 sm:$0xff]  }
  0x1a   :  { %1645 = vmatpush1.bf16.msra.mxu0 %v2361_v33  ;;  %v2427_v16 = vld [vmem:[%s3480_s3 + $0x38c] ss:$28 sps:$4 sm:$0xff]  }
  0x1b   :  { %1721 = vmatpush1.bf16.msra.mxu1 %v2340_v31  ;;  %1646 = vmatprep.subr.bf16.mxu0 %v2362_v34 }
  0x1c   :  { %1722 = vmatprep.subr.bf16.mxu1 %v2348_v32 }
  0x1e   :  { %1647 = vmatpush1.bf16.msra.mxu0 %v2367_v37 }
  0x1f   :  { %1723 = vmatpush1.bf16.msra.mxu1 %v2346_v35  ;;  %1648 = vmatprep.subr.bf16.mxu0 %v2368_v38 }
  0x20   :  { %1724 = vmatprep.subr.bf16.mxu1 %v2354_v36 }
  0x22   :  { %1649 = vmatpush1.bf16.msra.mxu0 %v2373_v41 }
  0x23   :  { %1725 = vmatpush1.bf16.msra.mxu1 %v2352_v39  ;;  %1650 = vmatprep.subr.bf16.mxu0 %v2374_v42 }
  0x24   :  { %1726 = vmatprep.subr.bf16.mxu1 %v2360_v40 }
  0x26   :  { %1651 = vmatpush1.bf16.msra.mxu0 %v2379_v45 }
  0x27   :  { %1727 = vmatpush1.bf16.msra.mxu1 %v2358_v43  ;;  %1652 = vmatprep.subr.bf16.mxu0 %v2380_v46 }
  0x28   :  { %1728 = vmatprep.subr.bf16.mxu1 %v2366_v44 }
  0x2a   :  { %1653 = vmatpush1.bf16.msra.mxu0 %v2385_v49 }
  0x2b   :  { %1729 = vmatpush1.bf16.msra.mxu1 %v2364_v47  ;;  %1654 = vmatprep.subr.bf16.mxu0 %v2386_v51 }
  0x2c   :  { %1730 = vmatprep.subr.bf16.mxu1 %v2372_v48 }
  0x2e   :  { %1655 = vmatpush1.bf16.msra.mxu0 %v2391_v53 }
  0x2f   :  { %1731 = vmatpush1.bf16.msra.mxu1 %v2370_v50  ;;  %1656 = vmatprep.subr.bf16.mxu0 %v2392_v54 }
  0x30   :  { %1732 = vmatprep.subr.bf16.mxu1 %v2378_v52 }
  0x32   :  { %1657 = vmatpush1.bf16.msra.mxu0 %v2397_v57 }
  0x33   :  { %1733 = vmatpush1.bf16.msra.mxu1 %v2376_v55  ;;  %1658 = vmatprep.subr.bf16.mxu0 %v2398_v58 }
  0x34   :  { %1734 = vmatprep.subr.bf16.mxu1 %v2384_v56 }
  0x36   :  { %1659 = vmatpush1.bf16.msra.mxu0 %v2403_v61 }
  0x37   :  { %1735 = vmatpush1.bf16.msra.mxu1 %v2382_v59  ;;  %1660 = vmatprep.subr.bf16.mxu0 %v2404_v62 }
  0x38   :  { %1736 = vmatprep.subr.bf16.mxu1 %v2390_v60 }
  0x3a   :  { %1661 = vmatpush1.bf16.msra.mxu0 %v2409_v1 }
  0x3b   :  { %1737 = vmatpush1.bf16.msra.mxu1 %v2388_v63  ;;  %1662 = vmatprep.subr.bf16.mxu0 %v2410_v7 }
  0x3c   :  { %1738 = vmatprep.subr.bf16.mxu1 %v2396_v0 }
  0x3e   :  { %1663 = vmatpush1.bf16.msra.mxu0 %v2415_v10 }
  0x3f   :  { %1739 = vmatpush1.bf16.msra.mxu1 %v2394_v2  ;;  %1664 = vmatprep.subr.bf16.mxu0 %v2416_v11 }
  0x40   :  { %1740 = vmatprep.subr.bf16.mxu1 %v2402_v3 }
  0x42   :  { %1665 = vmatpush1.bf16.msra.mxu0 %v2421_v14 }
  0x43   :  { %1741 = vmatpush1.bf16.msra.mxu1 %v2400_v4  ;;  %1675 = vmatprep.subr.bf16.mxu0 %v2424_v15 }
  0x44   :  { %1742 = vmatprep.subr.bf16.mxu1 %v2408_v5 }
  0x47   :  { %1743 = vmatpush1.bf16.msra.mxu1 %v2406_v6 }
  0x48   :  { %1744 = vmatprep.subr.bf16.mxu1 %v2414_v8 }
  0x4b   :  { %1745 = vmatpush1.bf16.msra.mxu1 %v2412_v9 }
  0x4c   :  { %1746 = vmatprep.subr.bf16.mxu1 %v2420_v12 }
  0x4f   :  { %1747 = vmatpush1.bf16.msra.mxu1 %v2418_v13 }
  0x50   :  { %1757 = vmatprep.subr.bf16.mxu1 %v2427_v16 }
  0x51   :  { %10 = vsyncpa [#allocation3], 0  ;;  %v32_v17 = vlaneseq  ;;  %v2933_v20 = vld [vmem:[%s3479_s2] sm:$0xf]  ;;  %v2425_v35 = vld [vmem:[%s3480_s3 + $0x388] ss:$28 sps:$4 sm:$0xff]  }
  0x52   :  { %v2422_v34 = vld [vmem:[%s3480_s3 + $0x380] ss:$28 sps:$4 sm:$0xff]   ;;  %v2428_v42 = vld [vmem:[%s3480_s3 + $0x3b8] ss:$28 sps:$4 sm:$0xff]   ;;  %v2434_v50 = vld [vmem:[%s3480_s3 + $0x3f0] ss:$28 sps:$4 sm:$0xff]  }
  0x53   :  { %v2927_v18 = vshrl.u32 %v32_v17, 7  ;;  %v2430_v38 = vld [vmem:[%s3480_s3 + $0x3bc] ss:$28 sps:$4 sm:$0xff]   ;;  %v2433_v39 = vld [vmem:[%s3480_s3 + $0x3c4] ss:$28 sps:$4 sm:$0xff]   ;;  %vm1992_vm2 = vcmask 125952  }
  0x54   :  { %v2431_v43 = vld [vmem:[%s3480_s3 + $0x3c0] ss:$28 sps:$4 sm:$0xff]   ;;  %v2436_v46 = vld [vmem:[%s3480_s3 + $0x3f4] ss:$28 sps:$4 sm:$0xff]   ;;  %v2442_v53 = vld [vmem:[%s3480_s3 + $0x42c] ss:$28 sps:$4 sm:$0xff]  }
  0x55   :  { %v34_v19 = vsub.s32 0, %v2927_v18  ;;  %v38_v21 = vsub.s32 1, %v2927_v18  ;;  %v46_v29 = vsub.s32 3, %v2927_v18  ;;  %v2439_v47 = vld [vmem:[%s3480_s3 + $0x3fc] ss:$28 sps:$4 sm:$0xff]  }
  0x56   :  { %v2437_v51 = vld [vmem:[%s3480_s3 + $0x3f8] ss:$28 sps:$4 sm:$0xff]   ;;  %v2440_v55 = vld [vmem:[%s3480_s3 + $0x428] ss:$28 sps:$4 sm:$0xff]   ;;  %v2443_v56 = vld [vmem:[%s3480_s3 + $0x430] ss:$28 sps:$4 sm:$0xff]  }
  0x57   :  { %v35_v22 = vrot.slane %v2933_v20, %v34_v19  ;;  %v39_v23 = vrot.slane %v2933_v20, %v38_v21  ;;  %v47_v36 = vrot.slane %v2933_v20, %v46_v29  ;;  %v2445_v54 = vld [vmem:[%s3480_s3 + $0x434] ss:$28 sps:$4 sm:$0xff]   ;;  %v2448_v57 = vld [vmem:[%s3480_s3 + $0x464] ss:$28 sps:$4 sm:$0xff]   ;;  %v2451_v58 = vld [vmem:[%s3480_s3 + $0x46c] ss:$28 sps:$4 sm:$0xff]  }
  0x58   :  { %v2446_v59 = vld [vmem:[%s3480_s3 + $0x460] ss:$28 sps:$4 sm:$0xff]   ;;  %v2449_v60 = vld [vmem:[%s3480_s3 + $0x468] ss:$28 sps:$4 sm:$0xff]   ;;  %v2452_v63 = vld [vmem:[%s3480_s3 + $0x498] ss:$28 sps:$4 sm:$0xff]  }
  0x59   :  { %v2454_v61 = vld [vmem:[%s3480_s3 + $0x49c] ss:$28 sps:$4 sm:$0xff]   ;;  %v2457_v62 = vld [vmem:[%s3480_s3 + $0x4a4] ss:$28 sps:$4 sm:$0xff]   ;;  %v2460_v1 = vld [vmem:[%s3480_s3 + $0x4d4] ss:$28 sps:$4 sm:$0xff]  }
  0x5a   :  { %v2455_v0 = vld [vmem:[%s3480_s3 + $0x4a0] ss:$28 sps:$4 sm:$0xff]   ;;  %v2458_v3 = vld [vmem:[%s3480_s3 + $0x4d0] ss:$28 sps:$4 sm:$0xff]   ;;  %v2461_v4 = vld [vmem:[%s3480_s3 + $0x4d8] ss:$28 sps:$4 sm:$0xff]  }
  0x5b   :  { %v2463_v2 = vld [vmem:[%s3480_s3 + $0x4dc] ss:$28 sps:$4 sm:$0xff]   ;;  %v2466_v5 = vld [vmem:[%s3480_s3 + $0x50c] ss:$28 sps:$4 sm:$0xff]   ;;  %v2469_v6 = vld [vmem:[%s3480_s3 + $0x514] ss:$28 sps:$4 sm:$0xff]  }
  0x5c   :  { %v2464_v7 = vld [vmem:[%s3480_s3 + $0x508] ss:$28 sps:$4 sm:$0xff]   ;;  %v2467_v8 = vld [vmem:[%s3480_s3 + $0x510] ss:$28 sps:$4 sm:$0xff]   ;;  %v2470_v11 = vld [vmem:[%s3480_s3 + $0x540] ss:$28 sps:$4 sm:$0xff]  }
  0x5d   :  { %v2472_v9 = vld [vmem:[%s3480_s3 + $0x544] ss:$28 sps:$4 sm:$0xff]   ;;  %v2475_v10 = vld [vmem:[%s3480_s3 + $0x54c] ss:$28 sps:$4 sm:$0xff]   ;;  %v2478_v13 = vld [vmem:[%s3480_s3 + $0x57c] ss:$28 sps:$4 sm:$0xff]  }
  0x5e   :  { %v2473_v12 = vld [vmem:[%s3480_s3 + $0x548] ss:$28 sps:$4 sm:$0xff]   ;;  %v2476_v15 = vld [vmem:[%s3480_s3 + $0x578] ss:$28 sps:$4 sm:$0xff]   ;;  %v2479_v16 = vld [vmem:[%s3480_s3 + $0x580] ss:$28 sps:$4 sm:$0xff]  }
  0x5f   :  { %v2481_v14 = vld [vmem:[%s3480_s3 + $0x584] ss:$28 sps:$4 sm:$0xff]   ;;  %v2484_v17 = vld [vmem:[%s3480_s3 + $0x5b4] ss:$28 sps:$4 sm:$0xff]  }
  0xdd   :  { %v133_v24 = vpop.f32.mrb[0].mxu1 }
  0xde   :  { %v134_v25 = vadd.f32 %v133_v24, %v35_v22  ;;  %v135_v26 = vpop.f32.mrb[1].mxu1  ;;  %v2487_v22 = vld [vmem:[%s3480_s3 + $0x5bc] ss:$28 sps:$4 sm:$0xff]  }
  0xdf   :  { %v136_v27 = vadd.f32 %v135_v26, %v39_v23  ;;  %v137_v28 = vpop.f32.mrb[2].mxu1  ;;  %v2482_v23 = vld [vmem:[%s3480_s3 + $0x5b0] ss:$28 sps:$4 sm:$0xff]   ;;  %v2485_v24 = vld [vmem:[%s3480_s3 + $0x5b8] ss:$28 sps:$4 sm:$0xff]  }
  0xe0   :  { %v181_v30 = vmax.f32 %v134_v25, 0.0  ;;  %v138_v31 = vpop.f32.mrb[3].mxu1  ;;  %v2490_v25 = vld [vmem:[%s3480_s3 + $0x5ec] ss:$28 sps:$4 sm:$0xff]   ;;  %v2493_v26 = vld [vmem:[%s3480_s3 + $0x5f4] ss:$28 sps:$4 sm:$0xff]  }
  0xe1   :  { %v182_v32 = vmax.f32 %v136_v27, 0.0  ;;  %v2488_v27 = vld [vmem:[%s3480_s3 + $0x5e8] ss:$28 sps:$4 sm:$0xff]   ;;  %v2491_v28 = vld [vmem:[%s3480_s3 + $0x5f0] ss:$28 sps:$4 sm:$0xff]  }
  0xe2   :  { %v2954_v37 = vpack.c.bf16 %v181_v30, %v181_v30  ;;  %v2496_v30 = vld [vmem:[%s3480_s3 + $0x624] ss:$28 sps:$4 sm:$0xff]   ;;  %v2499_v31 = vld [vmem:[%s3480_s3 + $0x62c] ss:$28 sps:$4 sm:$0xff]  }
  0xe3   :  { %v2943_v33 = vpack.c.bf16 %v182_v32, %v182_v32  ;;  %v42_v32 = vsub.s32 2, %v2927_v18 }
  0xe5   :  { %1666 = vmatprep.mubr.bf16.mxu0 %v2943_v33  ;;  %1748 = vmatprep.mubr.bf16.mxu1 %v2943_v33  ;;  %v2964_v40 = vpop.f32.mrb[4].mxu1 }
  0xe6   :  { %1667 = vmatmul.mubr.bf16.vlgmr.msra.gmra.mrb[0].mxu0 %v2954_v37  ;;  %1749 = vmatmul.mubr.bf16.vlgmr.msra.gmra.mrb[8].mxu1 %v2954_v37  ;;  %v176_v41 = vpop.f32.mrb[5].mxu1 }
  0xe7   :  { %1676 = vmatpush1.bf16.msra.mxu0 %v2422_v34  ;;  %1758 = vmatpush1.bf16.msra.mxu1 %v2425_v35  ;;  %v177_v44 = vadd.f32 %v176_v41, %v47_v36  ;;  %v178_v45 = vpop.f32.mrb[6].mxu1  ;;  %v2494_v34 = vld [vmem:[%s3480_s3 + $0x620] ss:$28 sps:$4 sm:$0xff]   ;;  %v2497_v35 = vld [vmem:[%s3480_s3 + $0x628] ss:$28 sps:$4 sm:$0xff]  }
  0xe8   :  { %1677 = vmatprep.subr.bf16.mxu0 %v2430_v38  ;;  %1759 = vmatprep.subr.bf16.mxu1 %v2433_v39  ;;  %v179_v48 = vpop.f32.mrb[7].mxu1  ;;  %v2502_v36 = vld [vmem:[%s3480_s3 + $0x65c] ss:$28 sps:$4 sm:$0xff]   ;;  %v2505_v38 = vld [vmem:[%s3480_s3 + $0x664] ss:$28 sps:$4 sm:$0xff]   ;;  %v43_v39 = vrot.slane %v2933_v20, %v42_v32 }
  0xe9   :  { %v184_v49 = vmax.f32 %v177_v44, 0.0  ;;  %v2500_v41 = vld [vmem:[%s3480_s3 + $0x658] ss:$28 sps:$4 sm:$0xff]   ;;  %v2506_v45 = vld [vmem:[%s3480_s3 + $0x690] ss:$28 sps:$4 sm:$0xff]  }
  0xea   :  { %v2511_v20 = vld [vmem:[%s3480_s3 + $0x69c] ss:$28 sps:$4 sm:$0xff]   ;;  %v175_v44 = vadd.f32 %v2964_v40, %v43_v39  ;;  %v2517_v40 = vld [vmem:[%s3480_s3 + $0x6d4] ss:$28 sps:$4 sm:$0xff]   ;;  %v2572_v39 = vld [vmem:[%s3480_s3 + $0x408] ss:$28 sps:$4 sm:$0xff]  }
  0xeb   :  { %1678 = vmatpush1.bf16.msra.mxu0 %v2428_v42  ;;  %1760 = vmatpush1.bf16.msra.mxu1 %v2431_v43  ;;  %v2986_v52 = vpack.c.bf16 %v184_v49, %v184_v49  ;;  %v2503_v42 = vld [vmem:[%s3480_s3 + $0x660] ss:$28 sps:$4 sm:$0xff]   ;;  %v2508_v43 = vld [vmem:[%s3480_s3 + $0x694] ss:$28 sps:$4 sm:$0xff]   ;;  %v2512_v49 = vld [vmem:[%s3480_s3 + $0x6c8] ss:$28 sps:$4 sm:$0xff]  }
  0xec   :  { %1679 = vmatprep.subr.bf16.mxu0 %v2436_v46  ;;  %1761 = vmatprep.subr.bf16.mxu1 %v2439_v47  ;;  %v2509_v46 = vld [vmem:[%s3480_s3 + $0x698] ss:$28 sps:$4 sm:$0xff]   ;;  %v2514_v47 = vld [vmem:[%s3480_s3 + $0x6cc] ss:$28 sps:$4 sm:$0xff]   ;;  %v183_v48 = vmax.f32 %v175_v44, 0.0 }
  0xed   :  { %1707 = vmatprep.mubr.bf16.mxu0 %v2986_v52  ;;  %1789 = vmatprep.mubr.bf16.mxu1 %v2986_v52  ;;  %v2580_v44 = vld [vmem:[%s3480_s3 + $0x2b4] ss:$28 sps:$4 sm:$0xff]  }
  0xef   :  { %1680 = vmatpush1.bf16.msra.mxu0 %v2434_v50  ;;  %1762 = vmatpush1.bf16.msra.mxu1 %v2437_v51  ;;  %v2515_v50 = vld [vmem:[%s3480_s3 + $0x6d0] ss:$28 sps:$4 sm:$0xff]  }
  0xf0   :  { %1681 = vmatprep.subr.bf16.mxu0 %v2442_v53  ;;  %1763 = vmatprep.subr.bf16.mxu1 %v2445_v54  ;;  %v2520_v51 = vld [vmem:[%s3480_s3 + $0x14] ss:$28 sps:$4 sm:$0xff]   ;;  %v3157_v54 = vpack.c.bf16 %v183_v48, %v183_v48 }
  0xf1   :  { %v2521_v53 = vld [vmem:[%s3480_s3 + $0x1d8] ss:$28 sps:$4 sm:$0xff]   ;;  %v2586_v48 = vld [vmem:[%s3480_s3 + $0x670] ss:$28 sps:$4 sm:$0xff]  }
  0xf3   :  { %1682 = vmatpush1.bf16.msra.mxu0 %v2440_v55  ;;  %1764 = vmatpush1.bf16.msra.mxu1 %v2443_v56  ;;  %v2518_v55 = vld [vmem:[%s3480_s3 + $0x10] ss:$28 sps:$4 sm:$0xff]   ;;  %v2522_v56 = vld [vmem:[%s3480_s3 + $0x18] ss:$28 sps:$4 sm:$0xff]  }
  0xf4   :  { %1683 = vmatprep.subr.bf16.mxu0 %v2448_v57  ;;  %1765 = vmatprep.subr.bf16.mxu1 %v2451_v58  ;;  %v2525_v57 = vld [vmem:[%s3480_s3 + $0x4c] ss:$28 sps:$4 sm:$0xff]  }
  0xf5   :  { %v2526_v58 = vld [vmem:[%s3480_s3 + $0x210] ss:$28 sps:$4 sm:$0xff]  }
  0xf7   :  { %1684 = vmatpush1.bf16.msra.mxu0 %v2446_v59  ;;  %1766 = vmatpush1.bf16.msra.mxu1 %v2449_v60  ;;  %v2523_v59 = vld [vmem:[%s3480_s3 + $0x48] ss:$28 sps:$4 sm:$0xff]   ;;  %v2527_v60 = vld [vmem:[%s3480_s3 + $0x50] ss:$28 sps:$4 sm:$0xff]  }
  0xf8   :  { %1685 = vmatprep.subr.bf16.mxu0 %v2454_v61  ;;  %1767 = vmatprep.subr.bf16.mxu1 %v2457_v62  ;;  %v2530_v61 = vld [vmem:[%s3480_s3 + $0x84] ss:$28 sps:$4 sm:$0xff]  }
  0xf9   :  { %v2531_v62 = vld [vmem:[%s3480_s3 + $0x248] ss:$28 sps:$4 sm:$0xff]  }
  0xfb   :  { %1686 = vmatpush1.bf16.msra.mxu0 %v2452_v63  ;;  %1768 = vmatpush1.bf16.msra.mxu1 %v2455_v0  ;;  %v2528_v63 = vld [vmem:[%s3480_s3 + $0x80] ss:$28 sps:$4 sm:$0xff]  }
  0xfc   :  { %1687 = vmatprep.subr.bf16.mxu0 %v2460_v1  ;;  %1769 = vmatprep.subr.bf16.mxu1 %v2463_v2  ;;  %v2535_v0 = vld [vmem:[%s3480_s3 + $0xbc] ss:$28 sps:$4 sm:$0xff]  }
  0xfd   :  { %v2536_v1 = vld [vmem:[%s3480_s3 + $0x280] ss:$28 sps:$4 sm:$0xff]   ;;  %v2533_v2 = vld [vmem:[%s3480_s3 + $0xb8] ss:$28 sps:$4 sm:$0xff]  }
  0xff   :  { %1688 = vmatpush1.bf16.msra.mxu0 %v2458_v3  ;;  %1770 = vmatpush1.bf16.msra.mxu1 %v2461_v4  ;;  %v2537_v3 = vld [vmem:[%s3480_s3 + $0xc0] ss:$28 sps:$4 sm:$0xff]   ;;  %v2540_v4 = vld [vmem:[%s3480_s3 + $0xf4] ss:$28 sps:$4 sm:$0xff]  }
 0x100   :  { %1689 = vmatprep.subr.bf16.mxu0 %v2466_v5  ;;  %1771 = vmatprep.subr.bf16.mxu1 %v2469_v6  ;;  %v2541_v5 = vld [vmem:[%s3480_s3 + $0x2b8] ss:$28 sps:$4 sm:$0xff]   ;;  %v2538_v6 = vld [vmem:[%s3480_s3 + $0xf0] ss:$28 sps:$4 sm:$0xff]  }
 0x103   :  { %1690 = vmatpush1.bf16.msra.mxu0 %v2464_v7  ;;  %1772 = vmatpush1.bf16.msra.mxu1 %v2467_v8  ;;  %v2542_v7 = vld [vmem:[%s3480_s3 + $0xf8] ss:$28 sps:$4 sm:$0xff]   ;;  %v2545_v8 = vld [vmem:[%s3480_s3 + $0x12c] ss:$28 sps:$4 sm:$0xff]  }
 0x104   :  { %1691 = vmatprep.subr.bf16.mxu0 %v2472_v9  ;;  %1773 = vmatprep.subr.bf16.mxu1 %v2475_v10  ;;  %v2546_v9 = vld [vmem:[%s3480_s3 + $0x2f0] ss:$28 sps:$4 sm:$0xff]   ;;  %v2543_v10 = vld [vmem:[%s3480_s3 + $0x128] ss:$28 sps:$4 sm:$0xff]  }
 0x107   :  { %1692 = vmatpush1.bf16.msra.mxu0 %v2470_v11  ;;  %1774 = vmatpush1.bf16.msra.mxu1 %v2473_v12  ;;  %v2547_v11 = vld [vmem:[%s3480_s3 + $0x130] ss:$28 sps:$4 sm:$0xff]   ;;  %v2550_v12 = vld [vmem:[%s3480_s3 + $0x164] ss:$28 sps:$4 sm:$0xff]  }
 0x108   :  { %1693 = vmatprep.subr.bf16.mxu0 %v2478_v13  ;;  %1775 = vmatprep.subr.bf16.mxu1 %v2481_v14  ;;  %v2551_v13 = vld [vmem:[%s3480_s3 + $0x328] ss:$28 sps:$4 sm:$0xff]   ;;  %v2548_v14 = vld [vmem:[%s3480_s3 + $0x160] ss:$28 sps:$4 sm:$0xff]  }
 0x10b   :  { %1694 = vmatpush1.bf16.msra.mxu0 %v2476_v15  ;;  %1776 = vmatpush1.bf16.msra.mxu1 %v2479_v16  ;;  %v2552_v15 = vld [vmem:[%s3480_s3 + $0x168] ss:$28 sps:$4 sm:$0xff]   ;;  %v2555_v16 = vld [vmem:[%s3480_s3 + $0x19c] ss:$28 sps:$4 sm:$0xff]  }
 0x10c   :  { %1695 = vmatprep.subr.bf16.mxu0 %v2484_v17  ;;  %1777 = vmatprep.subr.bf16.mxu1 %v2487_v22  ;;  %v2556_v17 = vld [vmem:[%s3480_s3 + $0x360] ss:$28 sps:$4 sm:$0xff]   ;;  %v2553_v22 = vld [vmem:[%s3480_s3 + $0x198] ss:$28 sps:$4 sm:$0xff]  }
 0x10f   :  { %1696 = vmatpush1.bf16.msra.mxu0 %v2482_v23  ;;  %1778 = vmatpush1.bf16.msra.mxu1 %v2485_v24  ;;  %v2557_v23 = vld [vmem:[%s3480_s3 + $0x1a0] ss:$28 sps:$4 sm:$0xff]   ;;  %v2560_v24 = vld [vmem:[%s3480_s3 + $0x1d4] ss:$28 sps:$4 sm:$0xff]  }
 0x110   :  { %1697 = vmatprep.subr.bf16.mxu0 %v2490_v25  ;;  %1779 = vmatprep.subr.bf16.mxu1 %v2493_v26  ;;  %v2561_v25 = vld [vmem:[%s3480_s3 + $0x558] ss:$28 sps:$4 sm:$0xff]   ;;  %v2558_v26 = vld [vmem:[%s3480_s3 + $0x1d0] ss:$28 sps:$4 sm:$0xff]  }
 0x113   :  { %1698 = vmatpush1.bf16.msra.mxu0 %v2488_v27  ;;  %1780 = vmatpush1.bf16.msra.mxu1 %v2491_v28  ;;  %v2562_v27 = vld [vmem:[%s3480_s3 + $0x398] ss:$28 sps:$4 sm:$0xff]   ;;  %v2565_v28 = vld [vmem:[%s3480_s3 + $0x20c] ss:$28 sps:$4 sm:$0xff]  }
 0x114   :  { %1699 = vmatprep.subr.bf16.mxu0 %v2496_v30  ;;  %1781 = vmatprep.subr.bf16.mxu1 %v2499_v31  ;;  %v2566_v30 = vld [vmem:[%s3480_s3 + $0x590] ss:$28 sps:$4 sm:$0xff]   ;;  %v2563_v31 = vld [vmem:[%s3480_s3 + $0x208] ss:$28 sps:$4 sm:$0xff]  }
 0x117   :  { %1700 = vmatpush1.bf16.msra.mxu0 %v2494_v34  ;;  %1782 = vmatpush1.bf16.msra.mxu1 %v2497_v35  ;;  %v2567_v34 = vld [vmem:[%s3480_s3 + $0x3d0] ss:$28 sps:$4 sm:$0xff]   ;;  %v2570_v35 = vld [vmem:[%s3480_s3 + $0x244] ss:$28 sps:$4 sm:$0xff]  }
 0x118   :  { %1701 = vmatprep.subr.bf16.mxu0 %v2502_v36  ;;  %1783 = vmatprep.subr.bf16.mxu1 %v2505_v38  ;;  %v2571_v36 = vld [vmem:[%s3480_s3 + $0x5c8] ss:$28 sps:$4 sm:$0xff]   ;;  %v2568_v38 = vld [vmem:[%s3480_s3 + $0x240] ss:$28 sps:$4 sm:$0xff]  }
 0x11b   :  { %1702 = vmatpush1.bf16.msra.mxu0 %v2500_v41  ;;  %1784 = vmatpush1.bf16.msra.mxu1 %v2503_v42  ;;  %v2575_v41 = vld [vmem:[%s3480_s3 + $0x27c] ss:$28 sps:$4 sm:$0xff]  }
 0x11c   :  { %1703 = vmatprep.subr.bf16.mxu0 %v2508_v43  ;;  %1785 = vmatprep.subr.bf16.mxu1 %v2511_v20  ;;  %v2576_v42 = vld [vmem:[%s3480_s3 + $0x600] ss:$28 sps:$4 sm:$0xff]   ;;  %v2573_v43 = vld [vmem:[%s3480_s3 + $0x278] ss:$28 sps:$4 sm:$0xff]  }
 0x11d   :  { %v2577_v20 = vld [vmem:[%s3480_s3 + $0x440] ss:$28 sps:$4 sm:$0xff]  }
 0x11f   :  { %1704 = vmatpush1.bf16.msra.mxu0 %v2506_v45  ;;  %1786 = vmatpush1.bf16.msra.mxu1 %v2509_v46  ;;  %v2581_v45 = vld [vmem:[%s3480_s3 + $0x638] ss:$28 sps:$4 sm:$0xff]   ;;  %v2578_v46 = vld [vmem:[%s3480_s3 + $0x2b0] ss:$28 sps:$4 sm:$0xff]  }
 0x120   :  { %1705 = vmatprep.subr.bf16.mxu0 %v2514_v47  ;;  %1787 = vmatprep.subr.bf16.mxu1 %v2517_v40  ;;  %v2582_v47 = vld [vmem:[%s3480_s3 + $0x478] ss:$28 sps:$4 sm:$0xff]   ;;  %v2585_v40 = vld [vmem:[%s3480_s3 + $0x2ec] ss:$28 sps:$4 sm:$0xff]  }
 0x123   :  { %1706 = vmatpush1.bf16.msra.mxu0 %v2512_v49  ;;  %1788 = vmatpush1.bf16.msra.mxu1 %v2515_v50  ;;  %v2583_v49 = vld [vmem:[%s3480_s3 + $0x2e8] ss:$28 sps:$4 sm:$0xff]   ;;  %v2587_v50 = vld [vmem:[%s3480_s3 + $0x4b0] ss:$28 sps:$4 sm:$0xff]  }
 0x124   :  { %1798 = vmatprep.subr.bf16.mxu0 %v2520_v51  ;;  %2252 = vmatprep.subr.bf16.mxu1 %v2521_v53  ;;  %v2590_v51 = vld [vmem:[%s3480_s3 + $0x324] ss:$28 sps:$4 sm:$0xff]  }
 0x125   :  { %v2591_v53 = vld [vmem:[%s3480_s3 + $0x6a8] ss:$28 sps:$4 sm:$0xff]  }
 0x126   :  { %1708 = vmatmul.mubr.bf16.vlgmr.msra.gmra.mrb[0].mxu0 %v3157_v54  ;;  %1790 = vmatmul.mubr.bf16.vlgmr.msra.gmra.mrb[8].mxu1 %v3157_v54 }
 0x127   :  { %1799 = vmatpush1.bf16.msra.mxu0 %v2518_v55  ;;  %1830 = vmatprep.mubr.bf16.mxu0 %v2943_v33  ;;  %v2588_v55 = vld [vmem:[%s3480_s3 + $0x320] ss:$28 sps:$4 sm:$0xff]  }
 0x128   :  { %2253 = vmatpush3.bf16.msra.mxu1 %v2522_v56  ;;  %1912 = vmatprep.mubr.bf16.mxu1 %v2943_v33  ;;  %v2532_v33 = vld [vmem:[%s3480_s3 + $0x88] ss:$28 sps:$4 sm:$0xff]  }
 0x129   :  { %1800 = vmatprep.subr.bf16.mxu0 %v2525_v57  ;;  %2254 = vmatprep.subr.bf16.mxu1 %v2526_v58  ;;  %v2592_v56 = vld [vmem:[%s3480_s3 + $0x4e8] ss:$28 sps:$4 sm:$0xff]   ;;  %v2595_v57 = vld [vmem:[%s3480_s3 + $0x35c] ss:$28 sps:$4 sm:$0xff]  }
 0x12a   :  { %v2596_v58 = vld [vmem:[%s3480_s3 + $0x6e0] ss:$28 sps:$4 sm:$0xff]  }
 0x12b   :  { %1801 = vmatpush1.bf16.msra.mxu0 %v2523_v59  ;;  %v2593_v59 = vld [vmem:[%s3480_s3 + $0x358] ss:$28 sps:$4 sm:$0xff]  }
 0x12c   :  { %2255 = vmatpush3.bf16.msra.mxu1 %v2527_v60  ;;  %1802 = vmatprep.subr.bf16.mxu0 %v2530_v61  ;;  %v2597_v60 = vld [vmem:[%s3480_s3 + $0x520] ss:$28 sps:$4 sm:$0xff]   ;;  %v2600_v61 = vld [vmem:[%s3480_s3 + $0x394] ss:$28 sps:$4 sm:$0xff]  }
 0x12d   :  { %2256 = vmatprep.subr.bf16.mxu1 %v2531_v62  ;;  %v2598_v62 = vld [vmem:[%s3480_s3 + $0x390] ss:$28 sps:$4 sm:$0xff]  }
 0x12f   :  { %1803 = vmatpush1.bf16.msra.mxu0 %v2528_v63  ;;  %v2603_v63 = vld [vmem:[%s3480_s3 + $0x3cc] ss:$28 sps:$4 sm:$0xff]  }
 0x130   :  { %2257 = vmatpush3.bf16.msra.mxu1 %v2532_v33  ;;  %1804 = vmatprep.subr.bf16.mxu0 %v2535_v0  ;;  %v2601_v33 = vld [vmem:[%s3480_s3 + $0x3c8] ss:$28 sps:$4 sm:$0xff]  }
 0x131   :  { %2258 = vmatprep.subr.bf16.mxu1 %v2536_v1  ;;  %v2606_v0 = vld [vmem:[%s3480_s3 + $0x404] ss:$28 sps:$4 sm:$0xff]  }
 0x132   :  { %v2604_v1 = vld [vmem:[%s3480_s3 + $0x400] ss:$28 sps:$4 sm:$0xff]  }
 0x133   :  { %1805 = vmatpush1.bf16.msra.mxu0 %v2533_v2  ;;  %v2612_v2 = vld [vmem:[%s3480_s3 + $0x474] ss:$28 sps:$4 sm:$0xff]  }
 0x134   :  { %2259 = vmatpush3.bf16.msra.mxu1 %v2537_v3  ;;  %1806 = vmatprep.subr.bf16.mxu0 %v2540_v4  ;;  %v2610_v3 = vld [vmem:[%s3480_s3 + $0x470] ss:$28 sps:$4 sm:$0xff]  }
 0x135   :  { %2260 = vmatprep.subr.bf16.mxu1 %v2541_v5  ;;  %v2615_v4 = vld [vmem:[%s3480_s3 + $0x4ac] ss:$28 sps:$4 sm:$0xff]  }
 0x136   :  { %v2613_v5 = vld [vmem:[%s3480_s3 + $0x4a8] ss:$28 sps:$4 sm:$0xff]  }
 0x137   :  { %1807 = vmatpush1.bf16.msra.mxu0 %v2538_v6  ;;  %v2618_v6 = vld [vmem:[%s3480_s3 + $0x4e4] ss:$28 sps:$4 sm:$0xff]  }
 0x138   :  { %2261 = vmatpush3.bf16.msra.mxu1 %v2542_v7  ;;  %1808 = vmatprep.subr.bf16.mxu0 %v2545_v8  ;;  %v2616_v7 = vld [vmem:[%s3480_s3 + $0x4e0] ss:$28 sps:$4 sm:$0xff]  }
 0x139   :  { %2262 = vmatprep.subr.bf16.mxu1 %v2546_v9  ;;  %v2621_v8 = vld [vmem:[%s3480_s3 + $0x51c] ss:$28 sps:$4 sm:$0xff]  }
 0x13a   :  { %v2619_v9 = vld [vmem:[%s3480_s3 + $0x518] ss:$28 sps:$4 sm:$0xff]  }
 0x13b   :  { %1809 = vmatpush1.bf16.msra.mxu0 %v2543_v10  ;;  %v2624_v10 = vld [vmem:[%s3480_s3 + $0x554] ss:$28 sps:$4 sm:$0xff]  }
 0x13c   :  { %2263 = vmatpush3.bf16.msra.mxu1 %v2547_v11  ;;  %1810 = vmatprep.subr.bf16.mxu0 %v2550_v12  ;;  %v2622_v11 = vld [vmem:[%s3480_s3 + $0x550] ss:$28 sps:$4 sm:$0xff]  }
 0x13d   :  { %2264 = vmatprep.subr.bf16.mxu1 %v2551_v13  ;;  %v2627_v12 = vld [vmem:[%s3480_s3 + $0x58c] ss:$28 sps:$4 sm:$0xff]  }
 0x13e   :  { %v2625_v13 = vld [vmem:[%s3480_s3 + $0x588] ss:$28 sps:$4 sm:$0xff]  }
 0x13f   :  { %1811 = vmatpush1.bf16.msra.mxu0 %v2548_v14  ;;  %v2630_v14 = vld [vmem:[%s3480_s3 + $0x5c4] ss:$28 sps:$4 sm:$0xff]  }
 0x140   :  { %2265 = vmatpush3.bf16.msra.mxu1 %v2552_v15  ;;  %1812 = vmatprep.subr.bf16.mxu0 %v2555_v16  ;;  %v2628_v15 = vld [vmem:[%s3480_s3 + $0x5c0] ss:$28 sps:$4 sm:$0xff]  }
 0x141   :  { %2266 = vmatprep.subr.bf16.mxu1 %v2556_v17  ;;  %v2633_v16 = vld [vmem:[%s3480_s3 + $0x5fc] ss:$28 sps:$4 sm:$0xff]  }
 0x142   :  { %v2631_v17 = vld [vmem:[%s3480_s3 + $0x5f8] ss:$28 sps:$4 sm:$0xff]  }
 0x143   :  { %1813 = vmatpush1.bf16.msra.mxu0 %v2553_v22  ;;  %v2636_v22 = vld [vmem:[%s3480_s3 + $0x634] ss:$28 sps:$4 sm:$0xff]  }
 0x144   :  { %2267 = vmatpush3.bf16.msra.mxu1 %v2557_v23  ;;  %1814 = vmatprep.subr.bf16.mxu0 %v2560_v24  ;;  %v2634_v23 = vld [vmem:[%s3480_s3 + $0x630] ss:$28 sps:$4 sm:$0xff]  }
 0x145   :  { %2274 = vmatprep.subr.bf16.mxu1 %v2561_v25  ;;  %v2639_v24 = vld [vmem:[%s3480_s3 + $0x66c] ss:$28 sps:$4 sm:$0xff]  }
 0x146   :  { %v2637_v25 = vld [vmem:[%s3480_s3 + $0x668] ss:$28 sps:$4 sm:$0xff]  }
 0x147   :  { %1913 = vmatmul.mubr.bf16.vlgmr.msra.gmra.mrb[12].mxu1 %v2954_v37  ;;  %1815 = vmatpush1.bf16.msra.mxu0 %v2558_v26  ;;  %v2642_v26 = vld [vmem:[%s3480_s3 + $0x6a4] ss:$28 sps:$4 sm:$0xff]  }
 0x148   :  { %2275 = vmatpush3.bf16.msra.mxu1 %v2562_v27  ;;  %1952 = vmatprep.mubr.bf16.mxu1 %v2986_v52  ;;  %v2640_v27 = vld [vmem:[%s3480_s3 + $0x6a0] ss:$28 sps:$4 sm:$0xff]  }
 0x149   :  { %1816 = vmatprep.subr.bf16.mxu0 %v2565_v28  ;;  %2276 = vmatprep.subr.bf16.mxu1 %v2566_v30  ;;  %v2645_v28 = vld [vmem:[%s3480_s3 + $0x6dc] ss:$28 sps:$4 sm:$0xff]  }
 0x14a   :  { %v2643_v30 = vld [vmem:[%s3480_s3 + $0x6d8] ss:$28 sps:$4 sm:$0xff]  }
 0x14b   :  { %1817 = vmatpush1.bf16.msra.mxu0 %v2563_v31  ;;  %v445_v31 = vld [vmem:[%s3481_s4] sm:$0x7f] }
 0x14c   :  { %2277 = vmatpush3.bf16.msra.mxu1 %v2567_v34  ;;  %1818 = vmatprep.subr.bf16.mxu0 %v2570_v35  ;;  %v450_v34 = vrot.slane %v445_v31, %v34_v19  ;;  %v458_v35 = vrot.slane %v445_v31, %v42_v32 }
 0x14d   :  { %2278 = vmatprep.subr.bf16.mxu1 %v2571_v36  ;;  %v454_v36 = vrot.slane %v445_v31, %v38_v21 }
 0x14f   :  { %1819 = vmatpush1.bf16.msra.mxu0 %v2568_v38  ;;  %v462_v38 = vrot.slane %v445_v31, %v46_v29 }
 0x150   :  { %2279 = vmatpush3.bf16.msra.mxu1 %v2572_v39  ;;  %1820 = vmatprep.subr.bf16.mxu0 %v2575_v41 }
 0x151   :  { %2280 = vmatprep.subr.bf16.mxu1 %v2576_v42 }
 0x153   :  { %1821 = vmatpush1.bf16.msra.mxu0 %v2573_v43 }
 0x154   :  { %2281 = vmatpush3.bf16.msra.mxu1 %v2577_v20  ;;  %1822 = vmatprep.subr.bf16.mxu0 %v2580_v44 }
 0x155   :  { %2282 = vmatprep.subr.bf16.mxu1 %v2581_v45 }
 0x157   :  { %1823 = vmatpush1.bf16.msra.mxu0 %v2578_v46 }
 0x158   :  { %2283 = vmatpush3.bf16.msra.mxu1 %v2582_v47  ;;  %1824 = vmatprep.subr.bf16.mxu0 %v2585_v40 }
 0x159   :  { %2284 = vmatprep.subr.bf16.mxu1 %v2586_v48 }
 0x15b   :  { %1825 = vmatpush1.bf16.msra.mxu0 %v2583_v49 }
 0x15c   :  { %2285 = vmatpush3.bf16.msra.mxu1 %v2587_v50  ;;  %1826 = vmatprep.subr.bf16.mxu0 %v2590_v51 }
 0x15d   :  { %2286 = vmatprep.subr.bf16.mxu1 %v2591_v53  ;;  %v473_v53 = vsub.s32 6, %v2927_v18 }
 0x15f   :  { %1827 = vmatpush1.bf16.msra.mxu0 %v2588_v55  ;;  %v474_v55 = vrot.slane %v445_v31, %v473_v53 }
 0x160   :  { %2287 = vmatpush3.bf16.msra.mxu1 %v2592_v56  ;;  %1828 = vmatprep.subr.bf16.mxu0 %v2595_v57 }
 0x161   :  { %2288 = vmatprep.subr.bf16.mxu1 %v2596_v58 }
 0x163   :  { %1829 = vmatpush1.bf16.msra.mxu0 %v2593_v59 }
 0x164   :  { %2289 = vmatpush3.bf16.msra.mxu1 %v2597_v60  ;;  %1839 = vmatprep.subr.bf16.mxu0 %v2600_v61 }
 0x166   :  { %1831 = vmatmul.mubr.bf16.vlgmr.msra.gmra.mrb[4].mxu0 %v2954_v37  ;;  %v2609_v37 = vld [vmem:[%s3480_s3 + $0x43c] ss:$28 sps:$4 sm:$0xff]  }
 0x167   :  { %1953 = vmatmul.mubr.bf16.vlgmr.msra.gmra.mrb[16].mxu1 %v3157_v54  ;;  %1840 = vmatpush1.bf16.msra.mxu0 %v2598_v62 }
 0x168   :  { %1871 = vmatprep.mubr.bf16.mxu0 %v2986_v52  ;;  %1841 = vmatprep.subr.bf16.mxu0 %v2603_v63  ;;  %v2607_v52 = vld [vmem:[%s3480_s3 + $0x438] ss:$28 sps:$4 sm:$0xff]   ;;  %s2671_s3 = smov [#allocation2]  }
 0x169   :  { %s2000_s4 = sshll.u32 %s2671_s3, 4  ;;  %s2001_s4 = int_to_ptr.vmem [resolvable:$true] %s2000_s4 }
 0x16a   :  { %s2646_s1 = scalar_lea.vmem %s2001_s4, 448  ;;  %p2651_p1 = scmp.lt.s32.totalorder %s2001_s4, %s2001_s4 }
 0x16b   :  { %1842 = vmatpush1.bf16.msra.mxu0 %v2601_v33  ;;  %v465_v33 = vsub.s32 4, %v2927_v18  ;;  %p2647_p0 = scmp.ne.s32.totalorder %s2001_s4, %s2646_s1  ;;  %p2652_p2 = scmp.lt.s32.totalorder %s2646_s1, %s2646_s1 }
 0x16c   :  { %1843 = vmatprep.subr.bf16.mxu0 %v2606_v0  ;;  %v469_v0 = vsub.s32 5, %v2927_v18 }
 0x16d   :  { %p2653_p3 = por %p2652_p2, %p2651_p1 }
 0x16f   :  { %1844 = vmatpush1.bf16.msra.mxu0 %v2604_v1  ;;  %v466_v1 = vrot.slane %v445_v31, %v465_v33  ;;  %p2654_p4 = pnand %p2653_p3, %p2647_p0 }
 0x170   :  { %1845 = vmatprep.subr.bf16.mxu0 %v2609_v37  ;;  %v470_v37 = vrot.slane %v445_v31, %v469_v0 }
 0x173   :  { %1846 = vmatpush1.bf16.msra.mxu0 %v2607_v52 }
 0x174   :  { %1847 = vmatprep.subr.bf16.mxu0 %v2612_v2 }
 0x177   :  { %1848 = vmatpush1.bf16.msra.mxu0 %v2610_v3 }
 0x178   :  { %1849 = vmatprep.subr.bf16.mxu0 %v2615_v4 }
 0x17b   :  { %1850 = vmatpush1.bf16.msra.mxu0 %v2613_v5 }
 0x17c   :  { %1851 = vmatprep.subr.bf16.mxu0 %v2618_v6 }
 0x17f   :  { %1852 = vmatpush1.bf16.msra.mxu0 %v2616_v7 }
 0x180   :  { %1853 = vmatprep.subr.bf16.mxu0 %v2621_v8 }
 0x183   :  { %1854 = vmatpush1.bf16.msra.mxu0 %v2619_v9 }
 0x184   :  { %1855 = vmatprep.subr.bf16.mxu0 %v2624_v10 }
 0x187   :  { %1856 = vmatpush1.bf16.msra.mxu0 %v2622_v11 }
 0x188   :  { %1857 = vmatprep.subr.bf16.mxu0 %v2627_v12 }
 0x18b   :  { %1858 = vmatpush1.bf16.msra.mxu0 %v2625_v13 }
 0x18c   :  { %1859 = vmatprep.subr.bf16.mxu0 %v2630_v14 }
 0x18f   :  { %1860 = vmatpush1.bf16.msra.mxu0 %v2628_v15 }
 0x190   :  { %1861 = vmatprep.subr.bf16.mxu0 %v2633_v16 }
 0x193   :  { %1862 = vmatpush1.bf16.msra.mxu0 %v2631_v17 }
 0x194   :  { %1863 = vmatprep.subr.bf16.mxu0 %v2636_v22 }
 0x197   :  { %1864 = vmatpush1.bf16.msra.mxu0 %v2634_v23 }
 0x198   :  { %1865 = vmatprep.subr.bf16.mxu0 %v2639_v24 }
 0x19b   :  { %1866 = vmatpush1.bf16.msra.mxu0 %v2637_v25 }
 0x19c   :  { %1867 = vmatprep.subr.bf16.mxu0 %v2642_v26 }
 0x19f   :  { %1868 = vmatpush1.bf16.msra.mxu0 %v2640_v27 }
 0x1a0   :  { %1869 = vmatprep.subr.bf16.mxu0 %v2645_v28 }
 0x1a3   :  { %1870 = vmatpush1.bf16.msra.mxu0 %v2643_v30 }
 0x1a6   :  { %1872 = vmatmul.mubr.bf16.vlgmr.msra.gmra.mrb[4].mxu0 %v3157_v54 }
 0x1f9   :  { %v1709_v39 = vpop.f32.mrb[0].mxu0  ;;  %v1791_v41 = vpop.f32.mrb[8].mxu1 }
 0x1fa   :  { %v2296_v42 = vadd.f32 %v1709_v39, %v450_v34  ;;  %v2298_v54 = vadd.f32 %v1791_v41, %v458_v35  ;;  %v1711_v43 = vpop.f32.mrb[1].mxu0  ;;  %v1793_v20 = vpop.f32.mrb[9].mxu1 }
 0x1fb   :  { %v2297_v44 = vadd.f32 %v1711_v43, %v454_v36  ;;  %v2299_v45 = vadd.f32 %v1793_v20, %v462_v38  ;;  %v1713_v46 = vpop.f32.mrb[2].mxu0  ;;  %v1795_v47 = vpop.f32.mrb[10].mxu1 }
 0x1fc   :  { %v1714_v19 = vpop.f32.mrb[3].mxu0  ;;  %v1796_v40 = vpop.f32.mrb[11].mxu1 }
 0x1fd   :  { %v2248_v48 = vpack.c.bf16 %v2297_v44, %v2296_v42  ;;  %v2249_v32 = vpack.c.bf16 %v2299_v45, %v2298_v54 }
 0x1ff   :  { %1989 = vst [vmem:[#allocation2] sm:$0xff] %v2248_v48  ;;  %1990 = vst [vmem:[#allocation2 + $0x8] sm:$0xff] %v2249_v32 }
 0x21a   :  { %v2268_v21 = vpop.f32.mrb[12].mxu1 }
 0x21b   :  { %v2269_v49 = vpop.f32.mrb[13].mxu1 }
 0x21c   :  { %v2270_v50 = vadd.f32 %v2269_v49, %v2268_v21  ;;  %v2271_v29 = vpop.f32.mrb[14].mxu1 }
 0x21d   :  { %v2272_v51 = vpop.f32.mrb[15].mxu1 }
 0x21e   :  { %v1915_v58 = vadd.f32 %v2270_v50, %v474_v55 }
 0x23a   :  { %v2290_v56 = vpop.f32.mrb[16].mxu1 }
 0x23b   :  { %v2291_v57 = vpop.f32.mrb[17].mxu1 }
 0x23c   :  { %v2292_v59 = vadd.f32 %v2291_v57, %v2290_v56  ;;  %v2293_v60 = vpop.f32.mrb[18].mxu1 }
 0x23d   :  { %v2294_v61 = vpop.f32.mrb[19].mxu1 }
 0x23e   :  { %v1955_v62 = vadd.f32 %v2292_v59, %v1915_v58 }
 0x240   :  { %v2251_v63 = vpack.c.bf16 %v1955_v62, %v1955_v62 }
 0x242   :  { %1993 = vst.msk [vmem:[#allocation2 + $0x18] sm:$0xf] %vm1992_vm2, %v2251_v63 }
 0x279   :  { %v1873_v52 = vpop.f32.mrb[4].mxu0 }
 0x27a   :  { %v2300_v2 = vadd.f32 %v1873_v52, %v466_v1  ;;  %v1875_v3 = vpop.f32.mrb[5].mxu0 }
 0x27b   :  { %v2301_v4 = vadd.f32 %v1875_v3, %v470_v37  ;;  %v1877_v5 = vpop.f32.mrb[6].mxu0 }
 0x27c   :  { %v1878_v6 = vpop.f32.mrb[7].mxu0 }
 0x27d   :  { %v2250_v7 = vpack.c.bf16 %v2301_v4, %v2300_v2 }
 0x27f   :  { %1991 = vst [vmem:[#allocation2 + $0x10] sm:$0xff] %v2250_v7 }
 0x280   :  { %2657 = shalt.err (!%p2654_p4)
}
 0x281   :  { %s2658_s16 = scalar_lea.hbm %s3482_s5, 448 }
 0x282   :  { %p2659_p5 = scmp.ne.s32.totalorder %s3482_s5, %s2658_s16  ;;  %p2662_p6 = scmp.lt.u32.totalorder %s2658_s16, %s3482_s5 }
 0x284   :  { %p2664_p7 = pnand %p2662_p6, %p2659_p5 }
 0x286   :  { %2667 = shalt.err (!%p2664_p7)
}
 0x287   :  { %2003 = dma.vmem_to_hbm [thread:$0]  %s2001_s4, 448, %s3482_s5, [#allocation3]  }
 0x288   :  { %2668 = dma.done.wait [#allocation3], 448  }
 0x289   :  { %2669 = vsyncadd [#allocation3], 4294966848 }
 0x28a   :  { %2007 = vsyncpa [#allocation3], 1 }

</bundles_post_ra>
